<compile_context>
chip_gen: v7x
topology: tpu7x:2x2x1
jax: 0.10.0
libtpu: 0.0.40
codegen_flags: <defaults>
</compile_context>

<pallas_src>
import math

import jax
import jax.numpy as jnp
from jax.experimental import pallas as pl
from jax.experimental.pallas import tpu as pltpu

Z_DIM, C_DIM = 50, 10
IN_DIM = Z_DIM + C_DIM     # 60
IN_PAD = 64                # lane-friendly input width (zero-padded)
H1, H2, H3 = 128, 384, 512
OUT_DIM = 784              # equals full array dim -> legal BlockSpec last dim
TILE_M_MAX = 512           # weights are ~1.4 MB bf16 and stay VMEM-resident


def _round_up(x, m):
    return (x + m - 1) // m * m


def _choose_tiling(batch):
    """Pick (tile_m, padded_batch, n_tiles) with low padding and >=2 steps
    when batch > 8 (keeps both v7x TensorCores busy)."""
    b8 = _round_up(max(batch, 1), 8)
    n_tiles = 1 if b8 <= 8 else max(2, pl.cdiv(b8, TILE_M_MAX))
    tile_m = _round_up(pl.cdiv(b8, n_tiles), 8)
    return tile_m, tile_m * n_tiles, n_tiles


def generator_kernel(x_ref, w1, b1, w2, b2, w3, b3, wh, bh, o_ref):
    # Layer 1 (concat already folded into a single padded 64x128 weight).
    h = jnp.dot(x_ref[...], w1[...], preferred_element_type=jnp.float32) + b1[...]
    h = jnp.maximum(h, 0.0).astype(jnp.bfloat16)
    h = jnp.dot(h, w2[...], preferred_element_type=jnp.float32) + b2[...]
    h = jnp.maximum(h, 0.0).astype(jnp.bfloat16)
    h = jnp.dot(h, w3[...], preferred_element_type=jnp.float32) + b3[...]
    h = jnp.maximum(h, 0.0).astype(jnp.bfloat16)
    # Head: no ReLU, fp32 output, fp32 bias.
    o_ref[...] = jnp.dot(h, wh[...], preferred_element_type=jnp.float32) + bh[...]


@jax.jit
def generator_forward(z, c, params):
    (w1, b1), (w2, b2), (w3, b3), (wh, bh) = params
    batch = z.shape[0]

    tile_m, bp, n_tiles = _choose_tiling(batch)

    # Fold torch.cat([z, c], 1) into the wrapper; pad rows to bp and lanes to 64.
    x = jnp.concatenate([z, c], axis=1).astype(jnp.bfloat16)
    x_p = jnp.pad(x, ((0, bp - batch), (0, IN_PAD - IN_DIM)))

    def act_spec(feat):
        return pl.BlockSpec((tile_m, feat), lambda i: (i, 0))

    def full(a):
        # Constant block index -> weights/biases stay VMEM-resident.
        return pl.BlockSpec(a.shape, lambda i: (0, 0))

    flops = 2 * bp * (IN_PAD * H1 + H1 * H2 + H2 * H3 + H3 * OUT_DIM)
    param_bytes = sum(int(a.size) * a.dtype.itemsize
                      for a in (w1, b1, w2, b2, w3, b3, wh, bh))
    bytes_accessed = (param_bytes
                      + x_p.size * x_p.dtype.itemsize
                      + bp * OUT_DIM * 4)

    out = pl.pallas_call(
        generator_kernel,
        out_shape=jax.ShapeDtypeStruct((bp, OUT_DIM), jnp.float32),
        grid=(n_tiles,),
        in_specs=[act_spec(IN_PAD),
                  full(w1), full(b1),
                  full(w2), full(b2),
                  full(w3), full(b3),
                  full(wh), full(bh)],
        out_specs=pl.BlockSpec((tile_m, OUT_DIM), lambda i: (i, 0)),
        compiler_params=pltpu.CompilerParams(
            dimension_semantics=("parallel",),
            vmem_limit_bytes=48 * 1024 * 1024),
        cost_estimate=pl.CostEstimate(
            flops=flops, transcendentals=0, bytes_accessed=bytes_accessed),
    )(x_p, w1, b1, w2, b2, w3, b3, wh, bh)

    return out if bp == batch else out[:batch]


def init_params(key):
    # Deterministic init mimicking PyTorch Linear default:
    # U(-1/sqrt(fan_in), 1/sqrt(fan_in)) for both weight and bias.
    dims = [(IN_DIM, H1), (H1, H2), (H2, H3), (H3, OUT_DIM)]
    raw = []
    for fin, fout in dims:
        key, kw, kb = jax.random.split(key, 3)
        bound = 1.0 / math.sqrt(fin)
        w = jax.random.uniform(kw, (fin, fout), jnp.float32, -bound, bound)
        b = jax.random.uniform(kb, (1, fout), jnp.float32, -bound, bound)
        raw.append((w, b))
    (w1, b1), (w2, b2), (w3, b3), (wh, bh) = raw

    # Pad layer-1 weight rows 60 -> 64 with zeros (matches the zero-padded
    # input lanes), store all weights bf16, all biases fp32.
    w1_p = jnp.zeros((IN_PAD, H1), jnp.float32).at[:IN_DIM].set(w1)

    return ((w1_p.astype(jnp.bfloat16), b1),
            (w2.astype(jnp.bfloat16), b2),
            (w3.astype(jnp.bfloat16), b3),
            (wh.astype(jnp.bfloat16), bh))


def reference_forward(z, c, params):
    # Pure-JAX reference with the same bf16 compute / fp32 accumulate recipe.
    (w1, b1), (w2, b2), (w3, b3), (wh, bh) = params
    x = jnp.concatenate([z, c], axis=1).astype(jnp.bfloat16)
    x = jnp.pad(x, ((0, 0), (0, IN_PAD - IN_DIM)))
    h = jnp.dot(x, w1, preferred_element_type=jnp.float32) + b1
    h = jnp.maximum(h, 0.0).astype(jnp.bfloat16)
    h = jnp.dot(h, w2, preferred_element_type=jnp.float32) + b2
    h = jnp.maximum(h, 0.0).astype(jnp.bfloat16)
    h = jnp.dot(h, w3, preferred_element_type=jnp.float32) + b3
    h = jnp.maximum(h, 0.0).astype(jnp.bfloat16)
    return jnp.dot(h, wh, preferred_element_type=jnp.float32) + bh


if __name__ == "__main__":
    key = jax.random.PRNGKey(0)
    kp, kz, kc = jax.random.split(key, 3)
    params = init_params(kp)

    batch = 2
    z = jax.random.normal(kz, (batch, Z_DIM), jnp.float32)
    c = jax.random.normal(kc, (batch, C_DIM), jnp.float32)

    out = jax.block_until_ready(generator_forward(z, c, params))
    ref = reference_forward(z, c, params)

    assert out.shape == (batch, OUT_DIM)
    assert jnp.allclose(out, ref, atol=2e-2, rtol=2e-2), float(
        jnp.max(jnp.abs(out - ref)))
    print("KERNEL_OK")
</pallas_src>

<mosaic_0001>
module attributes {stable_mosaic.version = 11 : i64} {
  func.func @generator_kernel(%arg0: i32, %arg1: memref<8x64xbf16, #tpu.memory_space<vmem>>, %arg2: memref<64x128xbf16, #tpu.memory_space<vmem>>, %arg3: memref<1x128xf32, #tpu.memory_space<vmem>>, %arg4: memref<128x384xbf16, #tpu.memory_space<vmem>>, %arg5: memref<1x384xf32, #tpu.memory_space<vmem>>, %arg6: memref<384x512xbf16, #tpu.memory_space<vmem>>, %arg7: memref<1x512xf32, #tpu.memory_space<vmem>>, %arg8: memref<512x784xbf16, #tpu.memory_space<vmem>>, %arg9: memref<1x784xf32, #tpu.memory_space<vmem>>, %arg10: memref<8x784xf32, #tpu.memory_space<vmem>>) attributes {dimension_semantics = [#tpu.dimension_semantics<parallel>], iteration_bounds = array<i64: 1>, scalar_prefetch = 0 : i64, scratch_operands = 0 : i64, tpu.core_type = #tpu.core_type<tc>, window_params = [{transform_indices = @transform_0, window_bounds = array<i64: 8, 64>}, {pipeline_mode = #tpu.pipeline_mode<synchronous>, transform_indices = @transform_1, window_bounds = array<i64: 64, 128>}, {pipeline_mode = #tpu.pipeline_mode<synchronous>, transform_indices = @transform_2, window_bounds = array<i64: 1, 128>}, {pipeline_mode = #tpu.pipeline_mode<synchronous>, transform_indices = @transform_3, window_bounds = array<i64: 128, 384>}, {pipeline_mode = #tpu.pipeline_mode<synchronous>, transform_indices = @transform_4, window_bounds = array<i64: 1, 384>}, {pipeline_mode = #tpu.pipeline_mode<synchronous>, transform_indices = @transform_5, window_bounds = array<i64: 384, 512>}, {pipeline_mode = #tpu.pipeline_mode<synchronous>, transform_indices = @transform_6, window_bounds = array<i64: 1, 512>}, {pipeline_mode = #tpu.pipeline_mode<synchronous>, transform_indices = @transform_7, window_bounds = array<i64: 512, 784>}, {pipeline_mode = #tpu.pipeline_mode<synchronous>, transform_indices = @transform_8, window_bounds = array<i64: 1, 784>}, {transform_indices = @transform_9, window_bounds = array<i64: 8, 784>}]} {
    %c0 = arith.constant 0 : index
    %c0_0 = arith.constant 0 : index
    %0 = vector.load %arg1[%c0, %c0_0] : memref<8x64xbf16, #tpu.memory_space<vmem>>, vector<8x64xbf16>
    %c0_1 = arith.constant 0 : index
    %c0_2 = arith.constant 0 : index
    %1 = vector.load %arg2[%c0_1, %c0_2] : memref<64x128xbf16, #tpu.memory_space<vmem>>, vector<64x128xbf16>
    %cst = arith.constant dense<0.000000e+00> : vector<8x128xf32>
    %2 = tpu.matmul %0, %1, %cst {dimension_numbers = #tpu.dot_dimension_numbers<[1], [0], [0], [1], [0, 0, 1, 1], [], []>} : vector<8x64xbf16>, vector<64x128xbf16>, vector<8x128xf32> -> vector<8x128xf32>
    %c0_3 = arith.constant 0 : index
    %c0_4 = arith.constant 0 : index
    %3 = vector.load %arg3[%c0_3, %c0_4] : memref<1x128xf32, #tpu.memory_space<vmem>>, vector<1x128xf32>
    %4 = vector.broadcast %3 : vector<1x128xf32> to vector<8x128xf32>
    %5 = arith.addf %2, %4 : vector<8x128xf32>
    %cst_5 = arith.constant 0.000000e+00 : f32
    %6 = vector.broadcast %cst_5 : f32 to vector<8x128xf32>
    %7 = arith.maximumf %5, %6 : vector<8x128xf32>
    %8 = arith.truncf %7 : vector<8x128xf32> to vector<8x128xbf16>
    %c0_6 = arith.constant 0 : index
    %c0_7 = arith.constant 0 : index
    %9 = vector.load %arg4[%c0_6, %c0_7] : memref<128x384xbf16, #tpu.memory_space<vmem>>, vector<128x384xbf16>
    %cst_8 = arith.constant dense<0.000000e+00> : vector<8x384xf32>
    %10 = tpu.matmul %8, %9, %cst_8 {dimension_numbers = #tpu.dot_dimension_numbers<[1], [0], [0], [1], [0, 0, 1, 1], [], []>} : vector<8x128xbf16>, vector<128x384xbf16>, vector<8x384xf32> -> vector<8x384xf32>
    %c0_9 = arith.constant 0 : index
    %c0_10 = arith.constant 0 : index
    %11 = vector.load %arg5[%c0_9, %c0_10] : memref<1x384xf32, #tpu.memory_space<vmem>>, vector<1x384xf32>
    %12 = vector.broadcast %11 : vector<1x384xf32> to vector<8x384xf32>
    %13 = arith.addf %10, %12 : vector<8x384xf32>
    %cst_11 = arith.constant 0.000000e+00 : f32
    %14 = vector.broadcast %cst_11 : f32 to vector<8x384xf32>
    %15 = arith.maximumf %13, %14 : vector<8x384xf32>
    %16 = arith.truncf %15 : vector<8x384xf32> to vector<8x384xbf16>
    %c0_12 = arith.constant 0 : index
    %c0_13 = arith.constant 0 : index
    %17 = vector.load %arg6[%c0_12, %c0_13] : memref<384x512xbf16, #tpu.memory_space<vmem>>, vector<384x512xbf16>
    %cst_14 = arith.constant dense<0.000000e+00> : vector<8x512xf32>
    %18 = tpu.matmul %16, %17, %cst_14 {dimension_numbers = #tpu.dot_dimension_numbers<[1], [0], [0], [1], [0, 0, 1, 1], [], []>} : vector<8x384xbf16>, vector<384x512xbf16>, vector<8x512xf32> -> vector<8x512xf32>
    %c0_15 = arith.constant 0 : index
    %c0_16 = arith.constant 0 : index
    %19 = vector.load %arg7[%c0_15, %c0_16] : memref<1x512xf32, #tpu.memory_space<vmem>>, vector<1x512xf32>
    %20 = vector.broadcast %19 : vector<1x512xf32> to vector<8x512xf32>
    %21 = arith.addf %18, %20 : vector<8x512xf32>
    %cst_17 = arith.constant 0.000000e+00 : f32
    %22 = vector.broadcast %cst_17 : f32 to vector<8x512xf32>
    %23 = arith.maximumf %21, %22 : vector<8x512xf32>
    %24 = arith.truncf %23 : vector<8x512xf32> to vector<8x512xbf16>
    %c0_18 = arith.constant 0 : index
    %c0_19 = arith.constant 0 : index
    %25 = vector.load %arg8[%c0_18, %c0_19] : memref<512x784xbf16, #tpu.memory_space<vmem>>, vector<512x784xbf16>
    %cst_20 = arith.constant dense<0.000000e+00> : vector<8x784xf32>
    %26 = tpu.matmul %24, %25, %cst_20 {dimension_numbers = #tpu.dot_dimension_numbers<[1], [0], [0], [1], [0, 0, 1, 1], [], []>} : vector<8x512xbf16>, vector<512x784xbf16>, vector<8x784xf32> -> vector<8x784xf32>
    %c0_21 = arith.constant 0 : index
    %c0_22 = arith.constant 0 : index
    %27 = vector.load %arg9[%c0_21, %c0_22] : memref<1x784xf32, #tpu.memory_space<vmem>>, vector<1x784xf32>
    %28 = vector.broadcast %27 : vector<1x784xf32> to vector<8x784xf32>
    %29 = arith.addf %26, %28 : vector<8x784xf32>
    %c0_23 = arith.constant 0 : index
    %c0_24 = arith.constant 0 : index
    %30 = vector.load %arg10[%c0_23, %c0_24] : memref<8x784xf32, #tpu.memory_space<vmem>>, vector<8x784xf32>
    tpu.vector_store %arg10[%c0_23, %c0_24], %29 {strides = array<i32>} : memref<8x784xf32, #tpu.memory_space<vmem>>, vector<8x784xf32>,
    return
  }
  func.func @transform_0(%arg0: i32) -> (i32, i32) {
    %c0_i32 = arith.constant 0 : i32
    %c0_i32_0 = arith.constant 0 : i32
    return %arg0, %c0_i32 : i32, i32
  }
  func.func @transform_1(%arg0: i32) -> (i32, i32) {
    %c0_i32 = arith.constant 0 : i32
    %c0_i32_0 = arith.constant 0 : i32
    %c0_i32_1 = arith.constant 0 : i32
    return %c0_i32, %c0_i32_0 : i32, i32
  }
  func.func @transform_2(%arg0: i32) -> (i32, i32) {
    %c0_i32 = arith.constant 0 : i32
    %c0_i32_0 = arith.constant 0 : i32
    %c0_i32_1 = arith.constant 0 : i32
    return %c0_i32, %c0_i32_0 : i32, i32
  }
  func.func @transform_3(%arg0: i32) -> (i32, i32) {
    %c0_i32 = arith.constant 0 : i32
    %c0_i32_0 = arith.constant 0 : i32
    %c0_i32_1 = arith.constant 0 : i32
    return %c0_i32, %c0_i32_0 : i32, i32
  }
  func.func @transform_4(%arg0: i32) -> (i32, i32) {
    %c0_i32 = arith.constant 0 : i32
    %c0_i32_0 = arith.constant 0 : i32
    %c0_i32_1 = arith.constant 0 : i32
    return %c0_i32, %c0_i32_0 : i32, i32
  }
  func.func @transform_5(%arg0: i32) -> (i32, i32) {
    %c0_i32 = arith.constant 0 : i32
    %c0_i32_0 = arith.constant 0 : i32
    %c0_i32_1 = arith.constant 0 : i32
    return %c0_i32, %c0_i32_0 : i32, i32
  }
  func.func @transform_6(%arg0: i32) -> (i32, i32) {
    %c0_i32 = arith.constant 0 : i32
    %c0_i32_0 = arith.constant 0 : i32
    %c0_i32_1 = arith.constant 0 : i32
    return %c0_i32, %c0_i32_0 : i32, i32
  }
  func.func @transform_7(%arg0: i32) -> (i32, i32) {
    %c0_i32 = arith.constant 0 : i32
    %c0_i32_0 = arith.constant 0 : i32
    %c0_i32_1 = arith.constant 0 : i32
    return %c0_i32, %c0_i32_0 : i32, i32
  }
  func.func @transform_8(%arg0: i32) -> (i32, i32) {
    %c0_i32 = arith.constant 0 : i32
    %c0_i32_0 = arith.constant 0 : i32
    %c0_i32_1 = arith.constant 0 : i32
    return %c0_i32, %c0_i32_0 : i32, i32
  }
  func.func @transform_9(%arg0: i32) -> (i32, i32) {
    %c0_i32 = arith.constant 0 : i32
    %c0_i32_0 = arith.constant 0 : i32
    return %arg0, %c0_i32 : i32, i32
  }
}

</mosaic_0001>

<bundles_post_ra>
// kernel: generator_forward.1
= control target key start
LH: loop header
LB: loop body
LE: loop exit
PB: predicated region body
PF: predicated region fallthrough
CT: control target
= control target key end

     0   :  { %v3909_v0 = vmov 0.0   ;;  %vm3910_vm0 = vmmov 0   ;;  %vm73_vm1 = vcmask 523264   ;;  %v3911_v22 = vmov 0   ;;  %s5127_s1 = inlined_call_operand.vmem [shape: bf16[64,128], index: 1, kind: input, shape index: {}]   ;;  %s5128_s3 = inlined_call_operand.vmem [shape: bf16[128,384], index: 3, kind: input, shape index: {}]   ;;  %s5129_s0 = inlined_call_operand.vmem [shape: bf16[8,64], index: 0, kind: input, shape index: {}]   ;;  %s5130_s5 = inlined_call_operand.vmem [shape: bf16[384,512], index: 5, kind: input, shape index: {}]   ;;  %s5131_s2 = inlined_call_operand.vmem [shape: f32[1,128], index: 2, kind: input, shape index: {}]   ;;  %s5132_s7 = inlined_call_operand.vmem [shape: bf16[512,784], index: 7, kind: input, shape index: {}]   ;;  %s5133_s4 = inlined_call_operand.vmem [shape: f32[1,384], index: 4, kind: input, shape index: {}]   ;;  %s5134_s6 = inlined_call_operand.vmem [shape: f32[1,512], index: 6, kind: input, shape index: {}]   ;;  %s5135_s8 = inlined_call_operand.vmem [shape: f32[1,784], index: 8, kind: input, shape index: {}]   ;;  %s5136_s9 = inlined_call_operand.vmem [shape: f32[8,784], index: 9, kind: output, shape index: {}]  }
   0x1   :  { %3344 = vmatprep.subr.bf16.mxu0 %v3909_v0  ;;  %v3409_v1 = vld [vmem:[%s5127_s1] sm:$0xff]   ;;  %3352 = vmatprep.mubr.msk.bf16.mxu0 %vm3910_vm0, %v3909_v0  ;;  %v3410_v2 = vld [vmem:[%s5127_s1 + $0x8] sm:$0xff]   ;;  %v3411_v3 = vld [vmem:[%s5127_s1 + $0x10] sm:$0xff]   ;;  %vm2930_vm2 = vcmask 130048  }
   0x2   :  { %3345 = vmatpush3.bf16.msra.mxu0 %v3409_v1  ;;  %v3412_v4 = vld [vmem:[%s5127_s1 + $0x18] sm:$0xff]   ;;  %v3415_v5 = vld [vmem:[%s5128_s3 + $0x4] ss:$12 sps:$4 sm:$0xff]   ;;  %v33_v6 = vld [vmem:[%s5129_s0] sm:$0xf] }
   0x3   :  { %3346 = vmatprep.subr.bf16.mxu0 %v3909_v0  ;;  %v3413_v7 = vld [vmem:[%s5128_s3] ss:$12 sps:$4 sm:$0xff]   ;;  %v3418_v8 = vld [vmem:[%s5128_s3 + $0x1c] ss:$12 sps:$4 sm:$0xff]   ;;  %v3416_v9 = vld [vmem:[%s5128_s3 + $0x18] ss:$12 sps:$4 sm:$0xff]  }
   0x4   :  { %v3421_v10 = vld [vmem:[%s5128_s3 + $0x34] ss:$12 sps:$4 sm:$0xff]   ;;  %v3419_v11 = vld [vmem:[%s5128_s3 + $0x30] ss:$12 sps:$4 sm:$0xff]   ;;  %v3424_v12 = vld [vmem:[%s5128_s3 + $0x4c] ss:$12 sps:$4 sm:$0xff]  }
   0x5   :  { %v3422_v13 = vld [vmem:[%s5128_s3 + $0x48] ss:$12 sps:$4 sm:$0xff]   ;;  %v3427_v14 = vld [vmem:[%s5128_s3 + $0x64] ss:$12 sps:$4 sm:$0xff]   ;;  %v3425_v15 = vld [vmem:[%s5128_s3 + $0x60] ss:$12 sps:$4 sm:$0xff]  }
   0x6   :  { %3347 = vmatpush3.bf16.msra.mxu0 %v3410_v2  ;;  %v3430_v16 = vld [vmem:[%s5128_s3 + $0x7c] ss:$12 sps:$4 sm:$0xff]   ;;  %v3428_v17 = vld [vmem:[%s5128_s3 + $0x78] ss:$12 sps:$4 sm:$0xff]   ;;  %v3433_v18 = vld [vmem:[%s5128_s3 + $0x94] ss:$12 sps:$4 sm:$0xff]  }
   0x7   :  { %3348 = vmatprep.subr.bf16.mxu0 %v3909_v0  ;;  %v3431_v19 = vld [vmem:[%s5128_s3 + $0x90] ss:$12 sps:$4 sm:$0xff]   ;;  %v3436_v20 = vld [vmem:[%s5128_s3 + $0xac] ss:$12 sps:$4 sm:$0xff]   ;;  %v3434_v21 = vld [vmem:[%s5128_s3 + $0xa8] ss:$12 sps:$4 sm:$0xff]  }
   0x8   :  { %v3445_v23 = vld [vmem:[%s5130_s5 + $0x4] ss:$16 sps:$4 sm:$0xff]   ;;  %v3450_v24 = vld [vmem:[%s5130_s5] ss:$16 sps:$4 sm:$0xff]  }
   0x9   :  { %981 = vmatprep.subr.bf16.mxu1 %v3445_v23  ;;  %v3451_v25 = vld [vmem:[%s5130_s5 + $0x24] ss:$16 sps:$4 sm:$0xff]   ;;  %v3456_v26 = vld [vmem:[%s5130_s5 + $0x20] ss:$16 sps:$4 sm:$0xff]   ;;  %v3501_v23 = vld [vmem:[%s5130_s5 + $0x128] ss:$16 sps:$4 sm:$0xff]  }
   0xa   :  { %3349 = vmatpush3.bf16.msra.mxu0 %v3411_v3  ;;  %982 = vmatpush1.bf16.msra.mxu1 %v3450_v24  ;;  %v3457_v27 = vld [vmem:[%s5130_s5 + $0x44] ss:$16 sps:$4 sm:$0xff]   ;;  %v3462_v28 = vld [vmem:[%s5130_s5 + $0x40] ss:$16 sps:$4 sm:$0xff]   ;;  %v3509_v24 = vld [vmem:[%s5130_s5 + $0x14c] ss:$16 sps:$4 sm:$0xff]  }
   0xb   :  { %3350 = vmatprep.subr.bf16.mxu0 %v3909_v0  ;;  %983 = vmatprep.subr.bf16.mxu1 %v3451_v25  ;;  %v3463_v29 = vld [vmem:[%s5130_s5 + $0x64] ss:$16 sps:$4 sm:$0xff]   ;;  %v3468_v30 = vld [vmem:[%s5130_s5 + $0x60] ss:$16 sps:$4 sm:$0xff]   ;;  %v3507_v25 = vld [vmem:[%s5130_s5 + $0x148] ss:$16 sps:$4 sm:$0xff]  }
   0xc   :  { %v3469_v31 = vld [vmem:[%s5130_s5 + $0x84] ss:$16 sps:$4 sm:$0xff]   ;;  %v3474_v32 = vld [vmem:[%s5130_s5 + $0x80] ss:$16 sps:$4 sm:$0xff]  }
   0xd   :  { %v3475_v33 = vld [vmem:[%s5130_s5 + $0xa4] ss:$16 sps:$4 sm:$0xff]   ;;  %v3480_v34 = vld [vmem:[%s5130_s5 + $0xa0] ss:$16 sps:$4 sm:$0xff]  }
   0xe   :  { %3351 = vmatpush3.bf16.msra.mxu0 %v3412_v4  ;;  %984 = vmatpush1.bf16.msra.mxu1 %v3456_v26  ;;  %v3481_v35 = vld [vmem:[%s5130_s5 + $0xc4] ss:$16 sps:$4 sm:$0xff]   ;;  %v3486_v36 = vld [vmem:[%s5130_s5 + $0xc0] ss:$16 sps:$4 sm:$0xff]   ;;  %v3449_v4 = vld [vmem:[%s5130_s5 + $0xc] ss:$16 sps:$4 sm:$0xff]  }
   0xf   :  { %296 = vmatprep.subr.bf16.mxu0 %v3415_v5  ;;  %985 = vmatprep.subr.bf16.mxu1 %v3457_v27  ;;  %v3487_v37 = vld [vmem:[%s5130_s5 + $0xe4] ss:$16 sps:$4 sm:$0xff]   ;;  %v3492_v38 = vld [vmem:[%s5130_s5 + $0xe0] ss:$16 sps:$4 sm:$0xff]   ;;  %v3447_v5 = vld [vmem:[%s5130_s5 + $0x8] ss:$16 sps:$4 sm:$0xff]  }
  0x10   :  { %v3493_v39 = vld [vmem:[%s5130_s5 + $0x104] ss:$16 sps:$4 sm:$0xff]   ;;  %v3498_v40 = vld [vmem:[%s5130_s5 + $0x100] ss:$16 sps:$4 sm:$0xff]   ;;  %v3515_v26 = vld [vmem:[%s5130_s5 + $0x16c] ss:$16 sps:$4 sm:$0xff]  }
  0x11   :  { %3353 = vmatmul.mubr.msk.bf16.vlgmr.msra.gmra.mrb[0].mxu0 %vm73_vm1, %v33_v6  ;;  %v3499_v41 = vld [vmem:[%s5130_s5 + $0x124] ss:$16 sps:$4 sm:$0xff]   ;;  %v3504_v42 = vld [vmem:[%s5130_s5 + $0x120] ss:$16 sps:$4 sm:$0xff]   ;;  %v3455_v6 = vld [vmem:[%s5130_s5 + $0x2c] ss:$16 sps:$4 sm:$0xff]  }
  0x12   :  { %297 = vmatpush1.bf16.msra.mxu0 %v3413_v7  ;;  %328 = vmatprep.mubr.bf16.mxu0 %v3911_v22  ;;  %v3505_v43 = vld [vmem:[%s5130_s5 + $0x144] ss:$16 sps:$4 sm:$0xff]   ;;  %v3510_v44 = vld [vmem:[%s5130_s5 + $0x140] ss:$16 sps:$4 sm:$0xff]   ;;  %v3461_v7 = vld [vmem:[%s5130_s5 + $0x4c] ss:$16 sps:$4 sm:$0xff]  }
  0x13   :  { %298 = vmatprep.subr.bf16.mxu0 %v3418_v8  ;;  %986 = vmatpush1.bf16.msra.mxu1 %v3462_v28  ;;  %v3511_v45 = vld [vmem:[%s5130_s5 + $0x164] ss:$16 sps:$4 sm:$0xff]   ;;  %v3516_v46 = vld [vmem:[%s5130_s5 + $0x160] ss:$16 sps:$4 sm:$0xff]   ;;  %v3459_v8 = vld [vmem:[%s5130_s5 + $0x48] ss:$16 sps:$4 sm:$0xff]  }
  0x14   :  { %987 = vmatprep.subr.bf16.mxu1 %v3463_v29  ;;  %v3517_v47 = vld [vmem:[%s5130_s5 + $0x184] ss:$16 sps:$4 sm:$0xff]   ;;  %v3522_v48 = vld [vmem:[%s5130_s5 + $0x180] ss:$16 sps:$4 sm:$0xff]   ;;  %v3513_v27 = vld [vmem:[%s5130_s5 + $0x168] ss:$16 sps:$4 sm:$0xff]  }
  0x15   :  { %v3523_v49 = vld [vmem:[%s5130_s5 + $0x1a4] ss:$16 sps:$4 sm:$0xff]   ;;  %v3528_v50 = vld [vmem:[%s5130_s5 + $0x1a0] ss:$16 sps:$4 sm:$0xff]   ;;  %v3521_v28 = vld [vmem:[%s5130_s5 + $0x18c] ss:$16 sps:$4 sm:$0xff]  }
  0x16   :  { %299 = vmatpush1.bf16.msra.mxu0 %v3416_v9  ;;  %v2936_v51 = vld [vmem:[%s5131_s2] ss:$0 sm:$0xff]  ;;  %v3437_v58 = vld [vmem:[%s5128_s3 + $0x8] ss:$12 sps:$4 sm:$0xff]   ;;  %v3439_v61 = vld [vmem:[%s5128_s3 + $0x38] ss:$12 sps:$4 sm:$0xff]  }
  0x17   :  { %300 = vmatprep.subr.bf16.mxu0 %v3421_v10  ;;  %988 = vmatpush1.bf16.msra.mxu1 %v3468_v30  ;;  %v3438_v60 = vld [vmem:[%s5128_s3 + $0x20] ss:$12 sps:$4 sm:$0xff]   ;;  %v3440_v62 = vld [vmem:[%s5128_s3 + $0x50] ss:$12 sps:$4 sm:$0xff]   ;;  %v3441_v63 = vld [vmem:[%s5128_s3 + $0x68] ss:$12 sps:$4 sm:$0xff]  }
  0x18   :  { %989 = vmatprep.subr.bf16.mxu1 %v3469_v31  ;;  %v3442_v1 = vld [vmem:[%s5128_s3 + $0x80] ss:$12 sps:$4 sm:$0xff]   ;;  %v3443_v2 = vld [vmem:[%s5128_s3 + $0x98] ss:$12 sps:$4 sm:$0xff]   ;;  %v3444_v3 = vld [vmem:[%s5128_s3 + $0xb0] ss:$12 sps:$4 sm:$0xff]  }
  0x19   :  { %v3467_v9 = vld [vmem:[%s5130_s5 + $0x6c] ss:$16 sps:$4 sm:$0xff]   ;;  %v3465_v10 = vld [vmem:[%s5130_s5 + $0x68] ss:$16 sps:$4 sm:$0xff]  }
  0x1a   :  { %301 = vmatpush1.bf16.msra.mxu0 %v3419_v11  ;;  %v3473_v11 = vld [vmem:[%s5130_s5 + $0x8c] ss:$16 sps:$4 sm:$0xff]   ;;  %v3519_v29 = vld [vmem:[%s5130_s5 + $0x188] ss:$16 sps:$4 sm:$0xff]  }
  0x1b   :  { %302 = vmatprep.subr.bf16.mxu0 %v3424_v12  ;;  %990 = vmatpush1.bf16.msra.mxu1 %v3474_v32  ;;  %v3471_v12 = vld [vmem:[%s5130_s5 + $0x88] ss:$16 sps:$4 sm:$0xff]   ;;  %v3527_v30 = vld [vmem:[%s5130_s5 + $0x1ac] ss:$16 sps:$4 sm:$0xff]   ;;  %v3529_v32 = vld [vmem:[%s5130_s5 + $0x1c4] ss:$16 sps:$4 sm:$0xff]  }
  0x1c   :  { %991 = vmatprep.subr.bf16.mxu1 %v3475_v33  ;;  %v3525_v31 = vld [vmem:[%s5130_s5 + $0x1a8] ss:$16 sps:$4 sm:$0xff]   ;;  %v3533_v33 = vld [vmem:[%s5130_s5 + $0x1cc] ss:$16 sps:$4 sm:$0xff]  }
  0x1e   :  { %303 = vmatpush1.bf16.msra.mxu0 %v3422_v13  ;;  %v3479_v13 = vld [vmem:[%s5130_s5 + $0xac] ss:$16 sps:$4 sm:$0xff]  }
  0x1f   :  { %304 = vmatprep.subr.bf16.mxu0 %v3427_v14  ;;  %992 = vmatpush1.bf16.msra.mxu1 %v3480_v34  ;;  %v3477_v14 = vld [vmem:[%s5130_s5 + $0xa8] ss:$16 sps:$4 sm:$0xff]   ;;  %v3534_v34 = vld [vmem:[%s5130_s5 + $0x1c0] ss:$16 sps:$4 sm:$0xff]  }
  0x20   :  { %993 = vmatprep.subr.bf16.mxu1 %v3481_v35  ;;  %v3531_v35 = vld [vmem:[%s5130_s5 + $0x1c8] ss:$16 sps:$4 sm:$0xff]  }
  0x22   :  { %305 = vmatpush1.bf16.msra.mxu0 %v3425_v15  ;;  %v3485_v15 = vld [vmem:[%s5130_s5 + $0xcc] ss:$16 sps:$4 sm:$0xff]  }
  0x23   :  { %306 = vmatprep.subr.bf16.mxu0 %v3430_v16  ;;  %994 = vmatpush1.bf16.msra.mxu1 %v3486_v36  ;;  %v3483_v16 = vld [vmem:[%s5130_s5 + $0xc8] ss:$16 sps:$4 sm:$0xff]   ;;  %v3535_v36 = vld [vmem:[%s5130_s5 + $0x1e4] ss:$16 sps:$4 sm:$0xff]  }
  0x24   :  { %995 = vmatprep.subr.bf16.mxu1 %v3487_v37  ;;  %v3539_v37 = vld [vmem:[%s5130_s5 + $0x1ec] ss:$16 sps:$4 sm:$0xff]  }
  0x26   :  { %307 = vmatpush1.bf16.msra.mxu0 %v3428_v17  ;;  %v3491_v17 = vld [vmem:[%s5130_s5 + $0xec] ss:$16 sps:$4 sm:$0xff]  }
  0x27   :  { %308 = vmatprep.subr.bf16.mxu0 %v3433_v18  ;;  %996 = vmatpush1.bf16.msra.mxu1 %v3492_v38  ;;  %v3489_v18 = vld [vmem:[%s5130_s5 + $0xe8] ss:$16 sps:$4 sm:$0xff]   ;;  %v3540_v38 = vld [vmem:[%s5130_s5 + $0x1e0] ss:$16 sps:$4 sm:$0xff]  }
  0x28   :  { %997 = vmatprep.subr.bf16.mxu1 %v3493_v39  ;;  %v3537_v39 = vld [vmem:[%s5130_s5 + $0x1e8] ss:$16 sps:$4 sm:$0xff]  }
  0x2a   :  { %309 = vmatpush1.bf16.msra.mxu0 %v3431_v19  ;;  %v3497_v19 = vld [vmem:[%s5130_s5 + $0x10c] ss:$16 sps:$4 sm:$0xff]  }
  0x2b   :  { %310 = vmatprep.subr.bf16.mxu0 %v3436_v20  ;;  %998 = vmatpush1.bf16.msra.mxu1 %v3498_v40  ;;  %v3495_v20 = vld [vmem:[%s5130_s5 + $0x108] ss:$16 sps:$4 sm:$0xff]   ;;  %v3543_v40 = vld [vmem:[%s5130_s5 + $0x204] ss:$16 sps:$4 sm:$0xff]  }
  0x2c   :  { %999 = vmatprep.subr.bf16.mxu1 %v3499_v41  ;;  %v3546_v41 = vld [vmem:[%s5130_s5 + $0x20c] ss:$16 sps:$4 sm:$0xff]  }
  0x2e   :  { %311 = vmatpush1.bf16.msra.mxu0 %v3434_v21  ;;  %v3503_v21 = vld [vmem:[%s5130_s5 + $0x12c] ss:$16 sps:$4 sm:$0xff]  }
  0x2f   :  { %3356 = vmatprep.subr.bf16.mxu0 %v3909_v0  ;;  %1000 = vmatpush1.bf16.msra.mxu1 %v3504_v42  ;;  %v153_v42 = vlaneseq }
  0x30   :  { %1001 = vmatprep.subr.bf16.mxu1 %v3505_v43 }
  0x31   :  { %v4267_v43 = vshrl.u32 %v153_v42, 7  ;;  %v3603_v42 = vld [vmem:[%s5132_s7 + $0x74] ss:$28 sps:$4 sm:$0xff]  }
  0x33   :  { %1002 = vmatpush1.bf16.msra.mxu1 %v3510_v44  ;;  %v4272_v44 = vld [vmem:[%s5133_s4] sm:$0x7] }
  0x34   :  { %1003 = vmatprep.subr.bf16.mxu1 %v3511_v45  ;;  %v4275_v45 = vsub.s32 0, %v4267_v43 }
  0x37   :  { %1004 = vmatpush1.bf16.msra.mxu1 %v3516_v46  ;;  %v4278_v46 = vsub.s32 1, %v4267_v43 }
  0x38   :  { %1005 = vmatprep.subr.bf16.mxu1 %v3517_v47  ;;  %v156_v47 = vrot.slane %v4272_v44, %v4275_v45 }
  0x3b   :  { %1006 = vmatpush1.bf16.msra.mxu1 %v3522_v48  ;;  %v160_v48 = vrot.slane %v4272_v44, %v4278_v46 }
  0x3c   :  { %1007 = vmatprep.subr.bf16.mxu1 %v3523_v49 }
  0x3f   :  { %1008 = vmatpush1.bf16.msra.mxu1 %v3528_v50 }
  0x40   :  { %1009 = vmatprep.subr.bf16.mxu1 %v3529_v32 }
  0x43   :  { %1010 = vmatpush1.bf16.msra.mxu1 %v3534_v34  ;;  %v3594_v34 = vld [vmem:[%s5132_s7 + $0xc] ss:$28 sps:$4 sm:$0xff]  }
  0x44   :  { %1011 = vmatprep.subr.bf16.mxu1 %v3535_v36  ;;  %v3592_v36 = vld [vmem:[%s5132_s7 + $0x8] ss:$28 sps:$4 sm:$0xff]  }
  0x47   :  { %1012 = vmatpush1.bf16.msra.mxu1 %v3540_v38  ;;  %v3597_v38 = vld [vmem:[%s5132_s7 + $0x3c] ss:$28 sps:$4 sm:$0xff]  }
  0x48   :  { %1022 = vmatprep.subr.bf16.mxu1 %v3543_v40  ;;  %v3595_v40 = vld [vmem:[%s5132_s7 + $0x38] ss:$28 sps:$4 sm:$0xff]  }
  0xe4   :  { %v111_v52 = vpop.f32.mrb[0].mxu0 }
  0xe5   :  { %v112_v53 = vadd.f32 %v2936_v51, %v111_v52  ;;  %v3354_v54 = vpop.f32.mrb[1].mxu0 }
  0xe6   :  { %v114_v55 = vpop.f32.mrb[2].mxu0 }
  0xe7   :  { %v117_v56 = vmax.f32 %v112_v53, 0.0  ;;  %v3355_v57 = vpop.f32.mrb[3].mxu0 }
  0xe8   :  { %v3541_v57 = vld [vmem:[%s5130_s5 + $0x200] ss:$16 sps:$4 sm:$0xff]  }
  0xe9   :  { %v118_v59 = vpack.c.bf16 %v117_v56, %v117_v56 }
  0xeb   :  { %329 = vmatmul.mubr.bf16.vlgmr.msra.gmra.mrb[4].mxu0 %v118_v59 }
  0xec   :  { %3357 = vmatpush3.bf16.msra.mxu0 %v3437_v58  ;;  %3372 = vmatprep.mubr.msk.bf16.mxu0 %vm3910_vm0, %v3909_v0  ;;  %v3544_v58 = vld [vmem:[%s5130_s5 + $0x208] ss:$16 sps:$4 sm:$0xff]  }
  0xed   :  { %3358 = vmatprep.subr.bf16.mxu0 %v3909_v0 }
  0xf0   :  { %3359 = vmatpush3.bf16.msra.mxu0 %v3438_v60  ;;  %v3552_v60 = vld [vmem:[%s5130_s5 + $0x22c] ss:$16 sps:$4 sm:$0xff]  }
  0xf1   :  { %3360 = vmatprep.subr.bf16.mxu0 %v3909_v0 }
  0xf4   :  { %3361 = vmatpush3.bf16.msra.mxu0 %v3439_v61 }
  0xf5   :  { %3362 = vmatprep.subr.bf16.mxu0 %v3909_v0 }
  0xf8   :  { %3363 = vmatpush3.bf16.msra.mxu0 %v3440_v62 }
  0xf9   :  { %3364 = vmatprep.subr.bf16.mxu0 %v3909_v0 }
  0xfc   :  { %3365 = vmatpush3.bf16.msra.mxu0 %v3441_v63  ;;  %v3547_v63 = vld [vmem:[%s5130_s5 + $0x220] ss:$16 sps:$4 sm:$0xff]  }
  0xfd   :  { %3366 = vmatprep.subr.bf16.mxu0 %v3909_v0 }
 0x100   :  { %3367 = vmatpush3.bf16.msra.mxu0 %v3442_v1  ;;  %v3550_v1 = vld [vmem:[%s5130_s5 + $0x228] ss:$16 sps:$4 sm:$0xff]  }
 0x101   :  { %3368 = vmatprep.subr.bf16.mxu0 %v3909_v0 }
 0x104   :  { %3369 = vmatpush3.bf16.msra.mxu0 %v3443_v2  ;;  %v3555_v2 = vld [vmem:[%s5130_s5 + $0x244] ss:$16 sps:$4 sm:$0xff]  }
 0x105   :  { %3370 = vmatprep.subr.bf16.mxu0 %v3909_v0  ;;  %v3453_v0 = vld [vmem:[%s5130_s5 + $0x28] ss:$16 sps:$4 sm:$0xff]  }
 0x108   :  { %3371 = vmatpush3.bf16.msra.mxu0 %v3444_v3  ;;  %v3558_v3 = vld [vmem:[%s5130_s5 + $0x24c] ss:$16 sps:$4 sm:$0xff]  }
 0x109   :  { %1063 = vmatprep.subr.bf16.mxu0 %v3449_v4  ;;  %v3553_v4 = vld [vmem:[%s5130_s5 + $0x240] ss:$16 sps:$4 sm:$0xff]  }
 0x10b   :  { %3373 = vmatmul.mubr.bf16.vlgmr.msra.gmra.mrb[8].mxu0 %v118_v59  ;;  %v3549_v59 = vld [vmem:[%s5130_s5 + $0x224] ss:$16 sps:$4 sm:$0xff]  }
 0x10c   :  { %1064 = vmatpush1.bf16.msra.mxu0 %v3447_v5  ;;  %v3556_v5 = vld [vmem:[%s5130_s5 + $0x248] ss:$16 sps:$4 sm:$0xff]  }
 0x10d   :  { %1065 = vmatprep.subr.bf16.mxu0 %v3455_v6  ;;  %v3561_v6 = vld [vmem:[%s5130_s5 + $0x264] ss:$16 sps:$4 sm:$0xff]  }
 0x110   :  { %1066 = vmatpush1.bf16.msra.mxu0 %v3453_v0  ;;  %v3564_v0 = vld [vmem:[%s5130_s5 + $0x26c] ss:$16 sps:$4 sm:$0xff]  }
 0x111   :  { %1067 = vmatprep.subr.bf16.mxu0 %v3461_v7  ;;  %v3559_v7 = vld [vmem:[%s5130_s5 + $0x260] ss:$16 sps:$4 sm:$0xff]  }
 0x114   :  { %1068 = vmatpush1.bf16.msra.mxu0 %v3459_v8  ;;  %v3567_v8 = vld [vmem:[%s5130_s5 + $0x284] ss:$16 sps:$4 sm:$0xff]  }
 0x115   :  { %1069 = vmatprep.subr.bf16.mxu0 %v3467_v9  ;;  %v3570_v9 = vld [vmem:[%s5130_s5 + $0x28c] ss:$16 sps:$4 sm:$0xff]  }
 0x118   :  { %1070 = vmatpush1.bf16.msra.mxu0 %v3465_v10  ;;  %v3565_v10 = vld [vmem:[%s5130_s5 + $0x280] ss:$16 sps:$4 sm:$0xff]  }
 0x119   :  { %1071 = vmatprep.subr.bf16.mxu0 %v3473_v11  ;;  %v3568_v11 = vld [vmem:[%s5130_s5 + $0x288] ss:$16 sps:$4 sm:$0xff]  }
 0x11c   :  { %1072 = vmatpush1.bf16.msra.mxu0 %v3471_v12  ;;  %v3573_v12 = vld [vmem:[%s5130_s5 + $0x2a4] ss:$16 sps:$4 sm:$0xff]  }
 0x11d   :  { %1073 = vmatprep.subr.bf16.mxu0 %v3479_v13  ;;  %v3576_v13 = vld [vmem:[%s5130_s5 + $0x2ac] ss:$16 sps:$4 sm:$0xff]  }
 0x120   :  { %1074 = vmatpush1.bf16.msra.mxu0 %v3477_v14  ;;  %v4347_v14 = vsub.s32 2, %v4267_v43 }
 0x121   :  { %1075 = vmatprep.subr.bf16.mxu0 %v3485_v15  ;;  %v3571_v15 = vld [vmem:[%s5130_s5 + $0x2a0] ss:$16 sps:$4 sm:$0xff]  }
 0x124   :  { %1076 = vmatpush1.bf16.msra.mxu0 %v3483_v16  ;;  %v3574_v16 = vld [vmem:[%s5130_s5 + $0x2a8] ss:$16 sps:$4 sm:$0xff]  }
 0x125   :  { %1077 = vmatprep.subr.bf16.mxu0 %v3491_v17  ;;  %v3579_v17 = vld [vmem:[%s5130_s5 + $0x2c4] ss:$16 sps:$4 sm:$0xff]  }
 0x128   :  { %1078 = vmatpush1.bf16.msra.mxu0 %v3489_v18  ;;  %v3582_v18 = vld [vmem:[%s5130_s5 + $0x2cc] ss:$16 sps:$4 sm:$0xff]  }
 0x129   :  { %1079 = vmatprep.subr.bf16.mxu0 %v3497_v19  ;;  %v164_v19 = vrot.slane %v4272_v44, %v4347_v14  ;;  %v3606_v44 = vld [vmem:[%s5132_s7 + $0x7c] ss:$28 sps:$4 sm:$0xff]  }
 0x12c   :  { %1080 = vmatpush1.bf16.msra.mxu0 %v3495_v20  ;;  %v3577_v20 = vld [vmem:[%s5130_s5 + $0x2c0] ss:$16 sps:$4 sm:$0xff]  }
 0x12d   :  { %1081 = vmatprep.subr.bf16.mxu0 %v3503_v21  ;;  %v3580_v21 = vld [vmem:[%s5130_s5 + $0x2c8] ss:$16 sps:$4 sm:$0xff]  }
 0x130   :  { %1082 = vmatpush1.bf16.msra.mxu0 %v3501_v23  ;;  %v3585_v23 = vld [vmem:[%s5130_s5 + $0x2e4] ss:$16 sps:$4 sm:$0xff]  }
 0x131   :  { %1083 = vmatprep.subr.bf16.mxu0 %v3509_v24  ;;  %v3588_v24 = vld [vmem:[%s5130_s5 + $0x2ec] ss:$16 sps:$4 sm:$0xff]  }
 0x134   :  { %1084 = vmatpush1.bf16.msra.mxu0 %v3507_v25 }
 0x135   :  { %1085 = vmatprep.subr.bf16.mxu0 %v3515_v26 }
 0x138   :  { %1086 = vmatpush1.bf16.msra.mxu0 %v3513_v27 }
 0x139   :  { %1087 = vmatprep.subr.bf16.mxu0 %v3521_v28 }
 0x13c   :  { %1088 = vmatpush1.bf16.msra.mxu0 %v3519_v29  ;;  %v3583_v29 = vld [vmem:[%s5130_s5 + $0x2e0] ss:$16 sps:$4 sm:$0xff]  }
 0x13d   :  { %1089 = vmatprep.subr.bf16.mxu0 %v3527_v30  ;;  %v3586_v30 = vld [vmem:[%s5130_s5 + $0x2e8] ss:$16 sps:$4 sm:$0xff]  }
 0x140   :  { %1090 = vmatpush1.bf16.msra.mxu0 %v3525_v31 }
 0x141   :  { %1091 = vmatprep.subr.bf16.mxu0 %v3533_v33  ;;  %v3591_v33 = vld [vmem:[%s5132_s7 + $0x4] ss:$28 sps:$4 sm:$0xff]  }
 0x144   :  { %1092 = vmatpush1.bf16.msra.mxu0 %v3531_v35  ;;  %v3589_v35 = vld [vmem:[%s5132_s7] ss:$28 sps:$4 sm:$0xff]  }
 0x145   :  { %1093 = vmatprep.subr.bf16.mxu0 %v3539_v37 }
 0x148   :  { %1094 = vmatpush1.bf16.msra.mxu0 %v3537_v39  ;;  %v3600_v39 = vld [vmem:[%s5132_s7 + $0x44] ss:$28 sps:$4 sm:$0xff]  }
 0x149   :  { %1104 = vmatprep.subr.bf16.mxu0 %v3546_v41  ;;  %v3598_v41 = vld [vmem:[%s5132_s7 + $0x40] ss:$28 sps:$4 sm:$0xff]  }
 0x1be   :  { %v330_v49 = vpop.f32.mrb[4].mxu0 }
 0x1bf   :  { %v331_v50 = vadd.f32 %v330_v49, %v156_v47  ;;  %v332_v51 = vpop.f32.mrb[5].mxu0  ;;  %v3601_v47 = vld [vmem:[%s5132_s7 + $0x70] ss:$28 sps:$4 sm:$0xff]  }
 0x1c0   :  { %v333_v52 = vadd.f32 %v332_v51, %v160_v48  ;;  %v334_v53 = vpop.f32.mrb[6].mxu0  ;;  %v3604_v48 = vld [vmem:[%s5132_s7 + $0x78] ss:$28 sps:$4 sm:$0xff]   ;;  %v3609_v49 = vld [vmem:[%s5132_s7 + $0xac] ss:$28 sps:$4 sm:$0xff]  }
 0x1c1   :  { %v377_v54 = vmax.f32 %v331_v50, 0.0  ;;  %v335_v55 = vpop.f32.mrb[7].mxu0  ;;  %v3612_v50 = vld [vmem:[%s5132_s7 + $0xb4] ss:$28 sps:$4 sm:$0xff]   ;;  %v3607_v51 = vld [vmem:[%s5132_s7 + $0xa8] ss:$28 sps:$4 sm:$0xff]  }
 0x1c2   :  { %v378_v56 = vmax.f32 %v333_v52, 0.0  ;;  %v3610_v52 = vld [vmem:[%s5132_s7 + $0xb0] ss:$28 sps:$4 sm:$0xff]   ;;  %v3615_v53 = vld [vmem:[%s5132_s7 + $0xe4] ss:$28 sps:$4 sm:$0xff]  }
 0x1c3   :  { %v380_v62 = vpack.c.bf16 %v377_v54, %v377_v54  ;;  %v3618_v54 = vld [vmem:[%s5132_s7 + $0xec] ss:$28 sps:$4 sm:$0xff]   ;;  %v3613_v55 = vld [vmem:[%s5132_s7 + $0xe0] ss:$28 sps:$4 sm:$0xff]  }
 0x1c4   :  { %v381_v61 = vpack.c.bf16 %v378_v56, %v378_v56  ;;  %v3616_v56 = vld [vmem:[%s5132_s7 + $0xe8] ss:$28 sps:$4 sm:$0xff]  }
 0x1c6   :  { %1013 = vmatprep.mubr.bf16.mxu1 %v381_v61  ;;  %1095 = vmatprep.mubr.bf16.mxu0 %v381_v61  ;;  %v3627_v61 = vld [vmem:[%s5132_s7 + $0x154] ss:$28 sps:$4 sm:$0xff]  }
 0x1c7   :  { %1014 = vmatmul.mubr.bf16.vlgmr.msra.gmra.mrb[0].mxu1 %v380_v62  ;;  %1096 = vmatmul.mubr.bf16.vlgmr.msra.gmra.mrb[12].mxu0 %v380_v62  ;;  %v3630_v62 = vld [vmem:[%s5132_s7 + $0x15c] ss:$28 sps:$4 sm:$0xff]  }
 0x1c8   :  { %1023 = vmatpush1.bf16.msra.mxu1 %v3541_v57  ;;  %1105 = vmatpush1.bf16.msra.mxu0 %v3544_v58  ;;  %v3621_v57 = vld [vmem:[%s5132_s7 + $0x11c] ss:$28 sps:$4 sm:$0xff]   ;;  %v3624_v58 = vld [vmem:[%s5132_s7 + $0x124] ss:$28 sps:$4 sm:$0xff]  }
 0x1c9   :  { %1024 = vmatprep.subr.bf16.mxu1 %v3549_v59  ;;  %1106 = vmatprep.subr.bf16.mxu0 %v3552_v60  ;;  %v3619_v59 = vld [vmem:[%s5132_s7 + $0x118] ss:$28 sps:$4 sm:$0xff]   ;;  %v3622_v60 = vld [vmem:[%s5132_s7 + $0x120] ss:$28 sps:$4 sm:$0xff]  }
 0x1ca   :  { %1054 = vmatprep.mubr.bf16.mxu1 %v3911_v22  ;;  %1136 = vmatprep.mubr.bf16.mxu0 %v3911_v22  ;;  %v3562_v22 = vld [vmem:[%s5130_s5 + $0x268] ss:$16 sps:$4 sm:$0xff]  }
 0x1cc   :  { %1025 = vmatpush1.bf16.msra.mxu1 %v3547_v63  ;;  %1107 = vmatpush1.bf16.msra.mxu0 %v3550_v1  ;;  %v3625_v63 = vld [vmem:[%s5132_s7 + $0x150] ss:$28 sps:$4 sm:$0xff]   ;;  %v3628_v1 = vld [vmem:[%s5132_s7 + $0x158] ss:$28 sps:$4 sm:$0xff]  }
 0x1cd   :  { %1026 = vmatprep.subr.bf16.mxu1 %v3555_v2  ;;  %1108 = vmatprep.subr.bf16.mxu0 %v3558_v3  ;;  %v3633_v2 = vld [vmem:[%s5132_s7 + $0x18c] ss:$28 sps:$4 sm:$0xff]   ;;  %v3636_v3 = vld [vmem:[%s5132_s7 + $0x194] ss:$28 sps:$4 sm:$0xff]  }
 0x1d0   :  { %1027 = vmatpush1.bf16.msra.mxu1 %v3553_v4  ;;  %1109 = vmatpush1.bf16.msra.mxu0 %v3556_v5  ;;  %v3631_v4 = vld [vmem:[%s5132_s7 + $0x188] ss:$28 sps:$4 sm:$0xff]   ;;  %v3634_v5 = vld [vmem:[%s5132_s7 + $0x190] ss:$28 sps:$4 sm:$0xff]  }
 0x1d1   :  { %1028 = vmatprep.subr.bf16.mxu1 %v3561_v6  ;;  %1110 = vmatprep.subr.bf16.mxu0 %v3564_v0  ;;  %v3639_v6 = vld [vmem:[%s5132_s7 + $0x1c4] ss:$28 sps:$4 sm:$0xff]   ;;  %v3642_v0 = vld [vmem:[%s5132_s7 + $0x1cc] ss:$28 sps:$4 sm:$0xff]  }
 0x1d4   :  { %1029 = vmatpush1.bf16.msra.mxu1 %v3559_v7  ;;  %1111 = vmatpush1.bf16.msra.mxu0 %v3562_v22  ;;  %v3637_v7 = vld [vmem:[%s5132_s7 + $0x1c0] ss:$28 sps:$4 sm:$0xff]   ;;  %v3640_v22 = vld [vmem:[%s5132_s7 + $0x1c8] ss:$28 sps:$4 sm:$0xff]  }
 0x1d5   :  { %1030 = vmatprep.subr.bf16.mxu1 %v3567_v8  ;;  %1112 = vmatprep.subr.bf16.mxu0 %v3570_v9  ;;  %v3645_v8 = vld [vmem:[%s5132_s7 + $0x1fc] ss:$28 sps:$4 sm:$0xff]   ;;  %v3648_v9 = vld [vmem:[%s5132_s7 + $0x204] ss:$28 sps:$4 sm:$0xff]  }
 0x1d8   :  { %1031 = vmatpush1.bf16.msra.mxu1 %v3565_v10  ;;  %1113 = vmatpush1.bf16.msra.mxu0 %v3568_v11  ;;  %v3643_v10 = vld [vmem:[%s5132_s7 + $0x1f8] ss:$28 sps:$4 sm:$0xff]   ;;  %v3646_v11 = vld [vmem:[%s5132_s7 + $0x200] ss:$28 sps:$4 sm:$0xff]  }
 0x1d9   :  { %1032 = vmatprep.subr.bf16.mxu1 %v3573_v12  ;;  %1114 = vmatprep.subr.bf16.mxu0 %v3576_v13  ;;  %v3651_v12 = vld [vmem:[%s5132_s7 + $0x234] ss:$28 sps:$4 sm:$0xff]   ;;  %v3654_v13 = vld [vmem:[%s5132_s7 + $0x23c] ss:$28 sps:$4 sm:$0xff]  }
 0x1dc   :  { %1033 = vmatpush1.bf16.msra.mxu1 %v3571_v15  ;;  %1115 = vmatpush1.bf16.msra.mxu0 %v3574_v16  ;;  %v3649_v15 = vld [vmem:[%s5132_s7 + $0x230] ss:$28 sps:$4 sm:$0xff]   ;;  %v3652_v16 = vld [vmem:[%s5132_s7 + $0x238] ss:$28 sps:$4 sm:$0xff]  }
 0x1dd   :  { %1034 = vmatprep.subr.bf16.mxu1 %v3579_v17  ;;  %1116 = vmatprep.subr.bf16.mxu0 %v3582_v18  ;;  %v3657_v17 = vld [vmem:[%s5132_s7 + $0x26c] ss:$28 sps:$4 sm:$0xff]   ;;  %v3660_v18 = vld [vmem:[%s5132_s7 + $0x274] ss:$28 sps:$4 sm:$0xff]  }
 0x1de   :  { %v371_v25 = vpop.f32.mrb[8].mxu0 }
 0x1df   :  { %v372_v26 = vadd.f32 %v371_v25, %v164_v19  ;;  %v3374_v27 = vpop.f32.mrb[9].mxu0  ;;  %v3655_v19 = vld [vmem:[%s5132_s7 + $0x268] ss:$28 sps:$4 sm:$0xff]  }
 0x1e0   :  { %v374_v28 = vpop.f32.mrb[10].mxu0  ;;  %1035 = vmatpush1.bf16.msra.mxu1 %v3577_v20  ;;  %1117 = vmatpush1.bf16.msra.mxu0 %v3580_v21  ;;  %v3658_v20 = vld [vmem:[%s5132_s7 + $0x270] ss:$28 sps:$4 sm:$0xff]   ;;  %v3663_v21 = vld [vmem:[%s5132_s7 + $0x2a4] ss:$28 sps:$4 sm:$0xff]  }
 0x1e1   :  { %v379_v31 = vmax.f32 %v372_v26, 0.0  ;;  %v3375_v32 = vpop.f32.mrb[11].mxu0  ;;  %1036 = vmatprep.subr.bf16.mxu1 %v3585_v23  ;;  %1118 = vmatprep.subr.bf16.mxu0 %v3588_v24  ;;  %v3666_v23 = vld [vmem:[%s5132_s7 + $0x2ac] ss:$28 sps:$4 sm:$0xff]   ;;  %v3661_v24 = vld [vmem:[%s5132_s7 + $0x2a0] ss:$28 sps:$4 sm:$0xff]  }
 0x1e2   :  { %v3664_v25 = vld [vmem:[%s5132_s7 + $0x2a8] ss:$28 sps:$4 sm:$0xff]   ;;  %v3669_v26 = vld [vmem:[%s5132_s7 + $0x2dc] ss:$28 sps:$4 sm:$0xff]   ;;  %v3673_v32 = vld [vmem:[%s5132_s7 + $0x310] ss:$28 sps:$4 sm:$0xff]  }
 0x1e3   :  { %v382_v37 = vpack.c.bf16 %v379_v31, %v379_v31  ;;  %v3672_v27 = vld [vmem:[%s5132_s7 + $0x2e4] ss:$28 sps:$4 sm:$0xff]   ;;  %v3667_v28 = vld [vmem:[%s5132_s7 + $0x2d8] ss:$28 sps:$4 sm:$0xff]  }
 0x1e4   :  { %1037 = vmatpush1.bf16.msra.mxu1 %v3583_v29  ;;  %1119 = vmatpush1.bf16.msra.mxu0 %v3586_v30  ;;  %v3670_v29 = vld [vmem:[%s5132_s7 + $0x2e0] ss:$28 sps:$4 sm:$0xff]   ;;  %v3675_v30 = vld [vmem:[%s5132_s7 + $0x314] ss:$28 sps:$4 sm:$0xff]  }
 0x1e5   :  { %2598 = vmatprep.subr.bf16.mxu1 %v3591_v33  ;;  %2680 = vmatprep.subr.bf16.mxu0 %v3594_v34  ;;  %v3678_v31 = vld [vmem:[%s5132_s7 + $0x31c] ss:$28 sps:$4 sm:$0xff]   ;;  %v3681_v34 = vld [vmem:[%s5132_s7 + $0x34c] ss:$28 sps:$4 sm:$0xff]  }
 0x1e6   :  { %v3676_v33 = vld [vmem:[%s5132_s7 + $0x318] ss:$28 sps:$4 sm:$0xff]  }
 0x1e7   :  { %1055 = vmatmul.mubr.bf16.vlgmr.msra.gmra.mrb[0].mxu1 %v382_v37  ;;  %1137 = vmatmul.mubr.bf16.vlgmr.msra.gmra.mrb[12].mxu0 %v382_v37  ;;  %v3682_v37 = vld [vmem:[%s5132_s7 + $0x350] ss:$28 sps:$4 sm:$0xff]  }
 0x1e8   :  { %2599 = vmatpush1.bf16.msra.mxu1 %v3589_v35  ;;  %2681 = vmatpush1.bf16.msra.mxu0 %v3592_v36  ;;  %v3684_v35 = vld [vmem:[%s5132_s7 + $0x354] ss:$28 sps:$4 sm:$0xff]   ;;  %v3679_v36 = vld [vmem:[%s5132_s7 + $0x348] ss:$28 sps:$4 sm:$0xff]  }
 0x1e9   :  { %2600 = vmatprep.subr.bf16.mxu1 %v3597_v38  ;;  %2682 = vmatprep.subr.bf16.mxu0 %v3600_v39  ;;  %v3687_v38 = vld [vmem:[%s5132_s7 + $0x384] ss:$28 sps:$4 sm:$0xff]   ;;  %v3690_v39 = vld [vmem:[%s5132_s7 + $0x38c] ss:$28 sps:$4 sm:$0xff]  }
 0x1ec   :  { %2601 = vmatpush1.bf16.msra.mxu1 %v3595_v40  ;;  %2683 = vmatpush1.bf16.msra.mxu0 %v3598_v41  ;;  %v4582_v40 = vld [vmem:[%s5134_s6] sm:$0xf]  ;;  %v495_v41 = vsub.s32 3, %v4267_v43 }
 0x1ed   :  { %2602 = vmatprep.subr.bf16.mxu1 %v3603_v42  ;;  %2684 = vmatprep.subr.bf16.mxu0 %v3606_v44  ;;  %v484_v42 = vrot.slane %v4582_v40, %v4275_v45  ;;  %v488_v44 = vrot.slane %v4582_v40, %v4278_v46 }
 0x1f0   :  { %2603 = vmatpush1.bf16.msra.mxu1 %v3601_v47  ;;  %2685 = vmatpush1.bf16.msra.mxu0 %v3604_v48  ;;  %v496_v47 = vrot.slane %v4582_v40, %v495_v41 }
 0x1f1   :  { %2604 = vmatprep.subr.bf16.mxu1 %v3609_v49  ;;  %2686 = vmatprep.subr.bf16.mxu0 %v3612_v50 }
 0x1f4   :  { %2605 = vmatpush1.bf16.msra.mxu1 %v3607_v51  ;;  %2687 = vmatpush1.bf16.msra.mxu0 %v3610_v52 }
 0x1f5   :  { %2606 = vmatprep.subr.bf16.mxu1 %v3615_v53  ;;  %2688 = vmatprep.subr.bf16.mxu0 %v3618_v54 }
 0x1f8   :  { %2607 = vmatpush1.bf16.msra.mxu1 %v3613_v55  ;;  %2689 = vmatpush1.bf16.msra.mxu0 %v3616_v56 }
 0x1f9   :  { %2608 = vmatprep.subr.bf16.mxu1 %v3621_v57  ;;  %2690 = vmatprep.subr.bf16.mxu0 %v3624_v58 }
 0x1fc   :  { %2609 = vmatpush1.bf16.msra.mxu1 %v3619_v59  ;;  %2691 = vmatpush1.bf16.msra.mxu0 %v3622_v60 }
 0x1fd   :  { %2610 = vmatprep.subr.bf16.mxu1 %v3627_v61  ;;  %2692 = vmatprep.subr.bf16.mxu0 %v3630_v62 }
 0x200   :  { %2611 = vmatpush1.bf16.msra.mxu1 %v3625_v63  ;;  %2693 = vmatpush1.bf16.msra.mxu0 %v3628_v1  ;;  %v3685_v63 = vld [vmem:[%s5132_s7 + $0x380] ss:$28 sps:$4 sm:$0xff]   ;;  %v3688_v1 = vld [vmem:[%s5132_s7 + $0x388] ss:$28 sps:$4 sm:$0xff]  }
 0x201   :  { %2612 = vmatprep.subr.bf16.mxu1 %v3633_v2  ;;  %2694 = vmatprep.subr.bf16.mxu0 %v3636_v3  ;;  %v3693_v3 = vld [vmem:[%s5132_s7 + $0x3bc] ss:$28 sps:$4 sm:$0xff]  }
 0x204   :  { %2613 = vmatpush1.bf16.msra.mxu1 %v3631_v4  ;;  %2695 = vmatpush1.bf16.msra.mxu0 %v3634_v5  ;;  %v3696_v4 = vld [vmem:[%s5132_s7 + $0x3c4] ss:$28 sps:$4 sm:$0xff]  }
 0x205   :  { %2614 = vmatprep.subr.bf16.mxu1 %v3639_v6  ;;  %2696 = vmatprep.subr.bf16.mxu0 %v3642_v0  ;;  %v3691_v6 = vld [vmem:[%s5132_s7 + $0x3b8] ss:$28 sps:$4 sm:$0xff]   ;;  %v3694_v0 = vld [vmem:[%s5132_s7 + $0x3c0] ss:$28 sps:$4 sm:$0xff]  }
 0x208   :  { %2615 = vmatpush1.bf16.msra.mxu1 %v3637_v7  ;;  %2697 = vmatpush1.bf16.msra.mxu0 %v3640_v22  ;;  %v3699_v7 = vld [vmem:[%s5132_s7 + $0x3f4] ss:$28 sps:$4 sm:$0xff]   ;;  %v3702_v22 = vld [vmem:[%s5132_s7 + $0x3fc] ss:$28 sps:$4 sm:$0xff]  }
 0x209   :  { %2616 = vmatprep.subr.bf16.mxu1 %v3645_v8  ;;  %2698 = vmatprep.subr.bf16.mxu0 %v3648_v9  ;;  %v3697_v8 = vld [vmem:[%s5132_s7 + $0x3f0] ss:$28 sps:$4 sm:$0xff]   ;;  %v3700_v9 = vld [vmem:[%s5132_s7 + $0x3f8] ss:$28 sps:$4 sm:$0xff]  }
 0x20c   :  { %2617 = vmatpush1.bf16.msra.mxu1 %v3643_v10  ;;  %2699 = vmatpush1.bf16.msra.mxu0 %v3646_v11  ;;  %v3705_v10 = vld [vmem:[%s5132_s7 + $0x42c] ss:$28 sps:$4 sm:$0xff]   ;;  %v3708_v11 = vld [vmem:[%s5132_s7 + $0x434] ss:$28 sps:$4 sm:$0xff]  }
 0x20d   :  { %2618 = vmatprep.subr.bf16.mxu1 %v3651_v12  ;;  %2700 = vmatprep.subr.bf16.mxu0 %v3654_v13  ;;  %v3703_v12 = vld [vmem:[%s5132_s7 + $0x428] ss:$28 sps:$4 sm:$0xff]   ;;  %v3706_v13 = vld [vmem:[%s5132_s7 + $0x430] ss:$28 sps:$4 sm:$0xff]  }
 0x210   :  { %2619 = vmatpush1.bf16.msra.mxu1 %v3649_v15  ;;  %2701 = vmatpush1.bf16.msra.mxu0 %v3652_v16  ;;  %v3711_v15 = vld [vmem:[%s5132_s7 + $0x464] ss:$28 sps:$4 sm:$0xff]   ;;  %v3714_v16 = vld [vmem:[%s5132_s7 + $0x46c] ss:$28 sps:$4 sm:$0xff]  }
 0x211   :  { %2620 = vmatprep.subr.bf16.mxu1 %v3657_v17  ;;  %2702 = vmatprep.subr.bf16.mxu0 %v3660_v18  ;;  %v3709_v17 = vld [vmem:[%s5132_s7 + $0x460] ss:$28 sps:$4 sm:$0xff]   ;;  %v3712_v18 = vld [vmem:[%s5132_s7 + $0x468] ss:$28 sps:$4 sm:$0xff]  }
 0x214   :  { %2621 = vmatpush1.bf16.msra.mxu1 %v3655_v19  ;;  %2703 = vmatpush1.bf16.msra.mxu0 %v3658_v20  ;;  %v3717_v19 = vld [vmem:[%s5132_s7 + $0x49c] ss:$28 sps:$4 sm:$0xff]   ;;  %v3720_v20 = vld [vmem:[%s5132_s7 + $0x4a4] ss:$28 sps:$4 sm:$0xff]  }
 0x215   :  { %2622 = vmatprep.subr.bf16.mxu1 %v3663_v21  ;;  %2704 = vmatprep.subr.bf16.mxu0 %v3666_v23  ;;  %v3715_v21 = vld [vmem:[%s5132_s7 + $0x498] ss:$28 sps:$4 sm:$0xff]   ;;  %v3718_v23 = vld [vmem:[%s5132_s7 + $0x4a0] ss:$28 sps:$4 sm:$0xff]  }
 0x218   :  { %2623 = vmatpush1.bf16.msra.mxu1 %v3661_v24  ;;  %2705 = vmatpush1.bf16.msra.mxu0 %v3664_v25  ;;  %v3723_v24 = vld [vmem:[%s5132_s7 + $0x4d4] ss:$28 sps:$4 sm:$0xff]   ;;  %v3726_v25 = vld [vmem:[%s5132_s7 + $0x4dc] ss:$28 sps:$4 sm:$0xff]  }
 0x219   :  { %2624 = vmatprep.subr.bf16.mxu1 %v3669_v26  ;;  %2706 = vmatprep.subr.bf16.mxu0 %v3672_v27  ;;  %v3721_v26 = vld [vmem:[%s5132_s7 + $0x4d0] ss:$28 sps:$4 sm:$0xff]   ;;  %v3724_v27 = vld [vmem:[%s5132_s7 + $0x4d8] ss:$28 sps:$4 sm:$0xff]  }
 0x21c   :  { %2625 = vmatpush1.bf16.msra.mxu1 %v3667_v28  ;;  %2707 = vmatpush1.bf16.msra.mxu0 %v3670_v29  ;;  %v3729_v28 = vld [vmem:[%s5132_s7 + $0x50c] ss:$28 sps:$4 sm:$0xff]   ;;  %v3732_v29 = vld [vmem:[%s5132_s7 + $0x514] ss:$28 sps:$4 sm:$0xff]  }
 0x21d   :  { %2626 = vmatprep.subr.bf16.mxu1 %v3675_v30  ;;  %2708 = vmatprep.subr.bf16.mxu0 %v3678_v31  ;;  %v3727_v30 = vld [vmem:[%s5132_s7 + $0x508] ss:$28 sps:$4 sm:$0xff]   ;;  %v3730_v31 = vld [vmem:[%s5132_s7 + $0x510] ss:$28 sps:$4 sm:$0xff]  }
 0x220   :  { %2627 = vmatpush1.bf16.msra.mxu1 %v3673_v32  ;;  %2709 = vmatpush1.bf16.msra.mxu0 %v3676_v33  ;;  %v3735_v32 = vld [vmem:[%s5132_s7 + $0x544] ss:$28 sps:$4 sm:$0xff]   ;;  %v3738_v33 = vld [vmem:[%s5132_s7 + $0x54c] ss:$28 sps:$4 sm:$0xff]  }
 0x221   :  { %2628 = vmatprep.subr.bf16.mxu1 %v3681_v34  ;;  %2710 = vmatprep.subr.bf16.mxu0 %v3684_v35  ;;  %v3733_v34 = vld [vmem:[%s5132_s7 + $0x540] ss:$28 sps:$4 sm:$0xff]   ;;  %v3736_v35 = vld [vmem:[%s5132_s7 + $0x548] ss:$28 sps:$4 sm:$0xff]  }
 0x224   :  { %2629 = vmatpush1.bf16.msra.mxu1 %v3679_v36  ;;  %2711 = vmatpush1.bf16.msra.mxu0 %v3682_v37  ;;  %v3741_v36 = vld [vmem:[%s5132_s7 + $0x57c] ss:$28 sps:$4 sm:$0xff]   ;;  %v3744_v37 = vld [vmem:[%s5132_s7 + $0x584] ss:$28 sps:$4 sm:$0xff]  }
 0x225   :  { %2639 = vmatprep.subr.bf16.mxu1 %v3687_v38  ;;  %2721 = vmatprep.subr.bf16.mxu0 %v3690_v39  ;;  %v3739_v38 = vld [vmem:[%s5132_s7 + $0x578] ss:$28 sps:$4 sm:$0xff]   ;;  %v3742_v39 = vld [vmem:[%s5132_s7 + $0x580] ss:$28 sps:$4 sm:$0xff]  }
 0x2ba   :  { %v1056_v48 = vpop.f32.mrb[0].mxu1  ;;  %v4592_v49 = vpop.f32.mrb[12].mxu0 }
 0x2bb   :  { %v3376_v50 = vadd.f32 %v1056_v48, %v484_v42  ;;  %v1058_v51 = vpop.f32.mrb[1].mxu1  ;;  %v1140_v52 = vpop.f32.mrb[13].mxu0  ;;  %v3747_v42 = vld [vmem:[%s5132_s7 + $0x5b4] ss:$28 sps:$4 sm:$0xff]  }
 0x2bc   :  { %v3377_v53 = vadd.f32 %v1058_v51, %v488_v44  ;;  %v3379_v54 = vadd.f32 %v1140_v52, %v496_v47  ;;  %v1060_v55 = vpop.f32.mrb[2].mxu1  ;;  %v1142_v56 = vpop.f32.mrb[14].mxu0  ;;  %v3750_v44 = vld [vmem:[%s5132_s7 + $0x5bc] ss:$28 sps:$4 sm:$0xff]   ;;  %v3745_v47 = vld [vmem:[%s5132_s7 + $0x5b0] ss:$28 sps:$4 sm:$0xff]  }
 0x2bd   :  { %v1145_v57 = vmax.f32 %v3376_v50, 0.0  ;;  %v1061_v58 = vpop.f32.mrb[3].mxu1  ;;  %v1143_v59 = vpop.f32.mrb[15].mxu0  ;;  %v3748_v48 = vld [vmem:[%s5132_s7 + $0x5b8] ss:$28 sps:$4 sm:$0xff]  }
 0x2be   :  { %v1146_v60 = vmax.f32 %v3377_v53, 0.0  ;;  %v1148_v61 = vmax.f32 %v3379_v54, 0.0  ;;  %v3753_v50 = vld [vmem:[%s5132_s7 + $0x5ec] ss:$28 sps:$4 sm:$0xff]   ;;  %v3756_v51 = vld [vmem:[%s5132_s7 + $0x5f4] ss:$28 sps:$4 sm:$0xff]  }
 0x2bf   :  { %v4602_v2 = vpack.c.bf16 %v1145_v57, %v1145_v57  ;;  %v3751_v52 = vld [vmem:[%s5132_s7 + $0x5e8] ss:$28 sps:$4 sm:$0xff]   ;;  %v3754_v53 = vld [vmem:[%s5132_s7 + $0x5f0] ss:$28 sps:$4 sm:$0xff]   ;;  %v3757_v56 = vld [vmem:[%s5132_s7 + $0x620] ss:$28 sps:$4 sm:$0xff]  }
 0x2c0   :  { %v4594_v62 = vpack.c.bf16 %v1146_v60, %v1146_v60  ;;  %v4612_v5 = vpack.c.bf16 %v1148_v61, %v1148_v61  ;;  %v3759_v54 = vld [vmem:[%s5132_s7 + $0x624] ss:$28 sps:$4 sm:$0xff]   ;;  %v3762_v55 = vld [vmem:[%s5132_s7 + $0x62c] ss:$28 sps:$4 sm:$0xff]   ;;  %v3765_v58 = vld [vmem:[%s5132_s7 + $0x65c] ss:$28 sps:$4 sm:$0xff]  }
 0x2c1   :  { %v3760_v57 = vld [vmem:[%s5132_s7 + $0x628] ss:$28 sps:$4 sm:$0xff]   ;;  %v3763_v60 = vld [vmem:[%s5132_s7 + $0x658] ss:$28 sps:$4 sm:$0xff]   ;;  %v3766_v61 = vld [vmem:[%s5132_s7 + $0x660] ss:$28 sps:$4 sm:$0xff]  }
 0x2c2   :  { %2630 = vmatprep.mubr.bf16.mxu1 %v4594_v62  ;;  %2712 = vmatprep.mubr.bf16.mxu0 %v4594_v62  ;;  %v3768_v59 = vld [vmem:[%s5132_s7 + $0x664] ss:$28 sps:$4 sm:$0xff]  }
 0x2c3   :  { %2631 = vmatmul.mubr.bf16.vlgmr.msra.gmra.mrb[4].mxu1 %v4602_v2  ;;  %2713 = vmatmul.mubr.bf16.vlgmr.msra.gmra.mrb[16].mxu0 %v4602_v2 }
 0x2c4   :  { %2640 = vmatpush1.bf16.msra.mxu1 %v3685_v63  ;;  %2722 = vmatpush1.bf16.msra.mxu0 %v3688_v1  ;;  %v492_v63 = vrot.slane %v4582_v40, %v4347_v14  ;;  %v3771_v1 = vld [vmem:[%s5132_s7 + $0x694] ss:$28 sps:$4 sm:$0xff]  }
 0x2c5   :  { %2671 = vmatprep.mubr.bf16.mxu1 %v4612_v5  ;;  %2753 = vmatprep.mubr.bf16.mxu0 %v4612_v5  ;;  %v3772_v40 = vld [vmem:[%s5132_s7 + $0x698] ss:$28 sps:$4 sm:$0xff]  }
 0x2c6   :  { %2641 = vmatprep.subr.bf16.mxu1 %v3693_v3  ;;  %2723 = vmatprep.subr.bf16.mxu0 %v3696_v4  ;;  %v3774_v3 = vld [vmem:[%s5132_s7 + $0x69c] ss:$28 sps:$4 sm:$0xff]   ;;  %v3769_v4 = vld [vmem:[%s5132_s7 + $0x690] ss:$28 sps:$4 sm:$0xff]  }
 0x2c8   :  { %2642 = vmatpush1.bf16.msra.mxu1 %v3691_v6  ;;  %2724 = vmatpush1.bf16.msra.mxu0 %v3694_v0  ;;  %v3378_v6 = vadd.f32 %v4592_v49, %v492_v63  ;;  %v3777_v0 = vld [vmem:[%s5132_s7 + $0x6cc] ss:$28 sps:$4 sm:$0xff]   ;;  %v3839_v63 = vld [vmem:[%s5132_s7 + $0x600] ss:$28 sps:$4 sm:$0xff]  }
 0x2c9   :  { %2643 = vmatprep.subr.bf16.mxu1 %v3699_v7  ;;  %2725 = vmatprep.subr.bf16.mxu0 %v3702_v22  ;;  %v3780_v7 = vld [vmem:[%s5132_s7 + $0x6d4] ss:$28 sps:$4 sm:$0xff]   ;;  %v3775_v22 = vld [vmem:[%s5132_s7 + $0x6c8] ss:$28 sps:$4 sm:$0xff]  }
 0x2ca   :  { %v3778_v49 = vld [vmem:[%s5132_s7 + $0x6d0] ss:$28 sps:$4 sm:$0xff]  }
 0x2cc   :  { %2644 = vmatpush1.bf16.msra.mxu1 %v3697_v8  ;;  %2726 = vmatpush1.bf16.msra.mxu0 %v3700_v9  ;;  %v1147_v8 = vmax.f32 %v3378_v6, 0.0  ;;  %v3783_v9 = vld [vmem:[%s5132_s7 + $0x14] ss:$28 sps:$4 sm:$0xff]  }
 0x2cd   :  { %2645 = vmatprep.subr.bf16.mxu1 %v3705_v10  ;;  %2727 = vmatprep.subr.bf16.mxu0 %v3708_v11  ;;  %v3784_v10 = vld [vmem:[%s5132_s7 + $0x1d8] ss:$28 sps:$4 sm:$0xff]   ;;  %v3781_v11 = vld [vmem:[%s5132_s7 + $0x10] ss:$28 sps:$4 sm:$0xff]  }
 0x2ce   :  { %v3841_v6 = vld [vmem:[%s5132_s7 + $0x2b0] ss:$28 sps:$4 sm:$0xff]  }
 0x2d0   :  { %2646 = vmatpush1.bf16.msra.mxu1 %v3703_v12  ;;  %2728 = vmatpush1.bf16.msra.mxu0 %v3706_v13  ;;  %v4804_v12 = vpack.c.bf16 %v1147_v8, %v1147_v8  ;;  %v3785_v13 = vld [vmem:[%s5132_s7 + $0x18] ss:$28 sps:$4 sm:$0xff]   ;;  %v3850_v8 = vld [vmem:[%s5132_s7 + $0x4b0] ss:$28 sps:$4 sm:$0xff]  }
 0x2d1   :  { %2647 = vmatprep.subr.bf16.mxu1 %v3711_v15  ;;  %2729 = vmatprep.subr.bf16.mxu0 %v3714_v16  ;;  %v3788_v15 = vld [vmem:[%s5132_s7 + $0x4c] ss:$28 sps:$4 sm:$0xff]  }
 0x2d2   :  { %v3789_v16 = vld [vmem:[%s5132_s7 + $0x210] ss:$28 sps:$4 sm:$0xff]  }
 0x2d4   :  { %2648 = vmatpush1.bf16.msra.mxu1 %v3709_v17  ;;  %2730 = vmatpush1.bf16.msra.mxu0 %v3712_v18  ;;  %v3786_v17 = vld [vmem:[%s5132_s7 + $0x48] ss:$28 sps:$4 sm:$0xff]   ;;  %v3790_v18 = vld [vmem:[%s5132_s7 + $0x50] ss:$28 sps:$4 sm:$0xff]  }
 0x2d5   :  { %2649 = vmatprep.subr.bf16.mxu1 %v3717_v19  ;;  %2731 = vmatprep.subr.bf16.mxu0 %v3720_v20  ;;  %v3793_v19 = vld [vmem:[%s5132_s7 + $0x84] ss:$28 sps:$4 sm:$0xff]  }
 0x2d6   :  { %v3794_v20 = vld [vmem:[%s5132_s7 + $0x248] ss:$28 sps:$4 sm:$0xff]  }
 0x2d8   :  { %2650 = vmatpush1.bf16.msra.mxu1 %v3715_v21  ;;  %2732 = vmatpush1.bf16.msra.mxu0 %v3718_v23  ;;  %v3791_v21 = vld [vmem:[%s5132_s7 + $0x80] ss:$28 sps:$4 sm:$0xff]  }
 0x2d9   :  { %2651 = vmatprep.subr.bf16.mxu1 %v3723_v24  ;;  %2733 = vmatprep.subr.bf16.mxu0 %v3726_v25  ;;  %v3798_v23 = vld [vmem:[%s5132_s7 + $0xbc] ss:$28 sps:$4 sm:$0xff]  }
 0x2da   :  { %v3799_v24 = vld [vmem:[%s5132_s7 + $0x280] ss:$28 sps:$4 sm:$0xff]   ;;  %v3796_v25 = vld [vmem:[%s5132_s7 + $0xb8] ss:$28 sps:$4 sm:$0xff]  }
 0x2dc   :  { %2652 = vmatpush1.bf16.msra.mxu1 %v3721_v26  ;;  %2734 = vmatpush1.bf16.msra.mxu0 %v3724_v27  ;;  %v3800_v26 = vld [vmem:[%s5132_s7 + $0xc0] ss:$28 sps:$4 sm:$0xff]   ;;  %v3803_v27 = vld [vmem:[%s5132_s7 + $0xf4] ss:$28 sps:$4 sm:$0xff]  }
 0x2dd   :  { %2653 = vmatprep.subr.bf16.mxu1 %v3729_v28  ;;  %2735 = vmatprep.subr.bf16.mxu0 %v3732_v29  ;;  %v3804_v28 = vld [vmem:[%s5132_s7 + $0x2b8] ss:$28 sps:$4 sm:$0xff]   ;;  %v3801_v29 = vld [vmem:[%s5132_s7 + $0xf0] ss:$28 sps:$4 sm:$0xff]  }
 0x2e0   :  { %2654 = vmatpush1.bf16.msra.mxu1 %v3727_v30  ;;  %2736 = vmatpush1.bf16.msra.mxu0 %v3730_v31  ;;  %v3805_v30 = vld [vmem:[%s5132_s7 + $0xf8] ss:$28 sps:$4 sm:$0xff]   ;;  %v3808_v31 = vld [vmem:[%s5132_s7 + $0x12c] ss:$28 sps:$4 sm:$0xff]  }
 0x2e1   :  { %2655 = vmatprep.subr.bf16.mxu1 %v3735_v32  ;;  %2737 = vmatprep.subr.bf16.mxu0 %v3738_v33  ;;  %v3809_v32 = vld [vmem:[%s5132_s7 + $0x2f0] ss:$28 sps:$4 sm:$0xff]   ;;  %v3806_v33 = vld [vmem:[%s5132_s7 + $0x128] ss:$28 sps:$4 sm:$0xff]  }
 0x2e4   :  { %2656 = vmatpush1.bf16.msra.mxu1 %v3733_v34  ;;  %2738 = vmatpush1.bf16.msra.mxu0 %v3736_v35  ;;  %v3810_v34 = vld [vmem:[%s5132_s7 + $0x130] ss:$28 sps:$4 sm:$0xff]   ;;  %v3813_v35 = vld [vmem:[%s5132_s7 + $0x164] ss:$28 sps:$4 sm:$0xff]  }
 0x2e5   :  { %2657 = vmatprep.subr.bf16.mxu1 %v3741_v36  ;;  %2739 = vmatprep.subr.bf16.mxu0 %v3744_v37  ;;  %v3814_v36 = vld [vmem:[%s5132_s7 + $0x328] ss:$28 sps:$4 sm:$0xff]   ;;  %v3811_v37 = vld [vmem:[%s5132_s7 + $0x160] ss:$28 sps:$4 sm:$0xff]  }
 0x2e8   :  { %2658 = vmatpush1.bf16.msra.mxu1 %v3739_v38  ;;  %2740 = vmatpush1.bf16.msra.mxu0 %v3742_v39  ;;  %v3815_v38 = vld [vmem:[%s5132_s7 + $0x168] ss:$28 sps:$4 sm:$0xff]   ;;  %v3818_v39 = vld [vmem:[%s5132_s7 + $0x19c] ss:$28 sps:$4 sm:$0xff]  }
 0x2e9   :  { %2659 = vmatprep.subr.bf16.mxu1 %v3747_v42  ;;  %2741 = vmatprep.subr.bf16.mxu0 %v3750_v44  ;;  %v3819_v42 = vld [vmem:[%s5132_s7 + $0x360] ss:$28 sps:$4 sm:$0xff]   ;;  %v3816_v44 = vld [vmem:[%s5132_s7 + $0x198] ss:$28 sps:$4 sm:$0xff]  }
 0x2ec   :  { %2660 = vmatpush1.bf16.msra.mxu1 %v3745_v47  ;;  %2742 = vmatpush1.bf16.msra.mxu0 %v3748_v48  ;;  %v3820_v47 = vld [vmem:[%s5132_s7 + $0x1a0] ss:$28 sps:$4 sm:$0xff]   ;;  %v3823_v48 = vld [vmem:[%s5132_s7 + $0x1d4] ss:$28 sps:$4 sm:$0xff]  }
 0x2ed   :  { %2661 = vmatprep.subr.bf16.mxu1 %v3753_v50  ;;  %2743 = vmatprep.subr.bf16.mxu0 %v3756_v51  ;;  %v3824_v50 = vld [vmem:[%s5132_s7 + $0x558] ss:$28 sps:$4 sm:$0xff]   ;;  %v3821_v51 = vld [vmem:[%s5132_s7 + $0x1d0] ss:$28 sps:$4 sm:$0xff]  }
 0x2f0   :  { %2662 = vmatpush1.bf16.msra.mxu1 %v3751_v52  ;;  %2744 = vmatpush1.bf16.msra.mxu0 %v3754_v53  ;;  %v3825_v52 = vld [vmem:[%s5132_s7 + $0x398] ss:$28 sps:$4 sm:$0xff]   ;;  %v3828_v53 = vld [vmem:[%s5132_s7 + $0x20c] ss:$28 sps:$4 sm:$0xff]  }
 0x2f1   :  { %2663 = vmatprep.subr.bf16.mxu1 %v3759_v54  ;;  %2745 = vmatprep.subr.bf16.mxu0 %v3762_v55  ;;  %v3829_v54 = vld [vmem:[%s5132_s7 + $0x590] ss:$28 sps:$4 sm:$0xff]   ;;  %v3826_v55 = vld [vmem:[%s5132_s7 + $0x208] ss:$28 sps:$4 sm:$0xff]  }
 0x2f4   :  { %2664 = vmatpush1.bf16.msra.mxu1 %v3757_v56  ;;  %2746 = vmatpush1.bf16.msra.mxu0 %v3760_v57  ;;  %v3830_v56 = vld [vmem:[%s5132_s7 + $0x3d0] ss:$28 sps:$4 sm:$0xff]   ;;  %v3833_v57 = vld [vmem:[%s5132_s7 + $0x244] ss:$28 sps:$4 sm:$0xff]  }
 0x2f5   :  { %2665 = vmatprep.subr.bf16.mxu1 %v3765_v58  ;;  %2747 = vmatprep.subr.bf16.mxu0 %v3768_v59  ;;  %v3834_v58 = vld [vmem:[%s5132_s7 + $0x5c8] ss:$28 sps:$4 sm:$0xff]   ;;  %v3831_v59 = vld [vmem:[%s5132_s7 + $0x240] ss:$28 sps:$4 sm:$0xff]  }
 0x2f8   :  { %2666 = vmatpush1.bf16.msra.mxu1 %v3763_v60  ;;  %2748 = vmatpush1.bf16.msra.mxu0 %v3766_v61  ;;  %v3835_v60 = vld [vmem:[%s5132_s7 + $0x408] ss:$28 sps:$4 sm:$0xff]   ;;  %v3838_v61 = vld [vmem:[%s5132_s7 + $0x27c] ss:$28 sps:$4 sm:$0xff]  }
 0x2f9   :  { %2667 = vmatprep.subr.bf16.mxu1 %v3771_v1  ;;  %2749 = vmatprep.subr.bf16.mxu0 %v3774_v3  ;;  %v3836_v1 = vld [vmem:[%s5132_s7 + $0x278] ss:$28 sps:$4 sm:$0xff]   ;;  %v3840_v3 = vld [vmem:[%s5132_s7 + $0x440] ss:$28 sps:$4 sm:$0xff]  }
 0x2fc   :  { %2668 = vmatpush1.bf16.msra.mxu1 %v3769_v4  ;;  %2750 = vmatpush1.bf16.msra.mxu0 %v3772_v40  ;;  %v3843_v4 = vld [vmem:[%s5132_s7 + $0x2b4] ss:$28 sps:$4 sm:$0xff]  }
 0x2fd   :  { %2669 = vmatprep.subr.bf16.mxu1 %v3777_v0  ;;  %2751 = vmatprep.subr.bf16.mxu0 %v3780_v7  ;;  %v3844_v40 = vld [vmem:[%s5132_s7 + $0x638] ss:$28 sps:$4 sm:$0xff]   ;;  %v3848_v7 = vld [vmem:[%s5132_s7 + $0x2ec] ss:$28 sps:$4 sm:$0xff]  }
 0x2fe   :  { %v3845_v0 = vld [vmem:[%s5132_s7 + $0x478] ss:$28 sps:$4 sm:$0xff]  }
 0x300   :  { %2670 = vmatpush1.bf16.msra.mxu1 %v3775_v22  ;;  %2752 = vmatpush1.bf16.msra.mxu0 %v3778_v49  ;;  %v3849_v22 = vld [vmem:[%s5132_s7 + $0x670] ss:$28 sps:$4 sm:$0xff]   ;;  %v3846_v49 = vld [vmem:[%s5132_s7 + $0x2e8] ss:$28 sps:$4 sm:$0xff]  }
 0x301   :  { %2762 = vmatprep.subr.bf16.mxu1 %v3783_v9  ;;  %3300 = vmatprep.subr.bf16.mxu0 %v3784_v10  ;;  %v3853_v9 = vld [vmem:[%s5132_s7 + $0x324] ss:$28 sps:$4 sm:$0xff]  }
 0x302   :  { %v3854_v10 = vld [vmem:[%s5132_s7 + $0x6a8] ss:$28 sps:$4 sm:$0xff]  }
 0x303   :  { %2672 = vmatmul.mubr.bf16.vlgmr.msra.gmra.mrb[4].mxu1 %v4804_v12  ;;  %2754 = vmatmul.mubr.bf16.vlgmr.msra.gmra.mrb[16].mxu0 %v4804_v12 }
 0x304   :  { %2763 = vmatpush1.bf16.msra.mxu1 %v3781_v11  ;;  %2794 = vmatprep.mubr.bf16.mxu1 %v4594_v62  ;;  %v3851_v11 = vld [vmem:[%s5132_s7 + $0x320] ss:$28 sps:$4 sm:$0xff]  }
 0x305   :  { %3301 = vmatpush3.bf16.msra.mxu0 %v3785_v13  ;;  %2876 = vmatprep.mubr.bf16.mxu0 %v4594_v62  ;;  %v3795_v62 = vld [vmem:[%s5132_s7 + $0x88] ss:$28 sps:$4 sm:$0xff]  }
 0x306   :  { %2764 = vmatprep.subr.bf16.mxu1 %v3788_v15  ;;  %3302 = vmatprep.subr.bf16.mxu0 %v3789_v16  ;;  %v3855_v13 = vld [vmem:[%s5132_s7 + $0x4e8] ss:$28 sps:$4 sm:$0xff]   ;;  %v3858_v15 = vld [vmem:[%s5132_s7 + $0x35c] ss:$28 sps:$4 sm:$0xff]  }
 0x307   :  { %v3859_v16 = vld [vmem:[%s5132_s7 + $0x6e0] ss:$28 sps:$4 sm:$0xff]  }
 0x308   :  { %2765 = vmatpush1.bf16.msra.mxu1 %v3786_v17  ;;  %v3856_v17 = vld [vmem:[%s5132_s7 + $0x358] ss:$28 sps:$4 sm:$0xff]  }
 0x309   :  { %3303 = vmatpush3.bf16.msra.mxu0 %v3790_v18  ;;  %2766 = vmatprep.subr.bf16.mxu1 %v3793_v19  ;;  %v3860_v18 = vld [vmem:[%s5132_s7 + $0x520] ss:$28 sps:$4 sm:$0xff]   ;;  %v3863_v19 = vld [vmem:[%s5132_s7 + $0x394] ss:$28 sps:$4 sm:$0xff]  }
 0x30a   :  { %3304 = vmatprep.subr.bf16.mxu0 %v3794_v20  ;;  %v3861_v20 = vld [vmem:[%s5132_s7 + $0x390] ss:$28 sps:$4 sm:$0xff]  }
 0x30c   :  { %2767 = vmatpush1.bf16.msra.mxu1 %v3791_v21  ;;  %v3866_v21 = vld [vmem:[%s5132_s7 + $0x3cc] ss:$28 sps:$4 sm:$0xff]  }
 0x30d   :  { %3305 = vmatpush3.bf16.msra.mxu0 %v3795_v62  ;;  %2768 = vmatprep.subr.bf16.mxu1 %v3798_v23  ;;  %v3864_v62 = vld [vmem:[%s5132_s7 + $0x3c8] ss:$28 sps:$4 sm:$0xff]  }
 0x30e   :  { %3306 = vmatprep.subr.bf16.mxu0 %v3799_v24  ;;  %v3869_v23 = vld [vmem:[%s5132_s7 + $0x404] ss:$28 sps:$4 sm:$0xff]  }
 0x30f   :  { %v3867_v24 = vld [vmem:[%s5132_s7 + $0x400] ss:$28 sps:$4 sm:$0xff]  }
 0x310   :  { %2769 = vmatpush1.bf16.msra.mxu1 %v3796_v25  ;;  %v3875_v25 = vld [vmem:[%s5132_s7 + $0x474] ss:$28 sps:$4 sm:$0xff]  }
 0x311   :  { %3307 = vmatpush3.bf16.msra.mxu0 %v3800_v26  ;;  %2770 = vmatprep.subr.bf16.mxu1 %v3803_v27  ;;  %v3873_v26 = vld [vmem:[%s5132_s7 + $0x470] ss:$28 sps:$4 sm:$0xff]  }
 0x312   :  { %3308 = vmatprep.subr.bf16.mxu0 %v3804_v28  ;;  %v3878_v27 = vld [vmem:[%s5132_s7 + $0x4ac] ss:$28 sps:$4 sm:$0xff]  }
 0x313   :  { %v3876_v28 = vld [vmem:[%s5132_s7 + $0x4a8] ss:$28 sps:$4 sm:$0xff]  }
 0x314   :  { %2771 = vmatpush1.bf16.msra.mxu1 %v3801_v29  ;;  %v3881_v29 = vld [vmem:[%s5132_s7 + $0x4e4] ss:$28 sps:$4 sm:$0xff]  }
 0x315   :  { %3309 = vmatpush3.bf16.msra.mxu0 %v3805_v30  ;;  %2772 = vmatprep.subr.bf16.mxu1 %v3808_v31  ;;  %v3879_v30 = vld [vmem:[%s5132_s7 + $0x4e0] ss:$28 sps:$4 sm:$0xff]  }
 0x316   :  { %3310 = vmatprep.subr.bf16.mxu0 %v3809_v32  ;;  %v3884_v31 = vld [vmem:[%s5132_s7 + $0x51c] ss:$28 sps:$4 sm:$0xff]  }
 0x317   :  { %v3882_v32 = vld [vmem:[%s5132_s7 + $0x518] ss:$28 sps:$4 sm:$0xff]  }
 0x318   :  { %2773 = vmatpush1.bf16.msra.mxu1 %v3806_v33  ;;  %v3887_v33 = vld [vmem:[%s5132_s7 + $0x554] ss:$28 sps:$4 sm:$0xff]  }
 0x319   :  { %3311 = vmatpush3.bf16.msra.mxu0 %v3810_v34  ;;  %2774 = vmatprep.subr.bf16.mxu1 %v3813_v35  ;;  %v3885_v34 = vld [vmem:[%s5132_s7 + $0x550] ss:$28 sps:$4 sm:$0xff]  }
 0x31a   :  { %3312 = vmatprep.subr.bf16.mxu0 %v3814_v36  ;;  %v3890_v35 = vld [vmem:[%s5132_s7 + $0x58c] ss:$28 sps:$4 sm:$0xff]  }
 0x31b   :  { %v3888_v36 = vld [vmem:[%s5132_s7 + $0x588] ss:$28 sps:$4 sm:$0xff]  }
 0x31c   :  { %2775 = vmatpush1.bf16.msra.mxu1 %v3811_v37  ;;  %v3893_v37 = vld [vmem:[%s5132_s7 + $0x5c4] ss:$28 sps:$4 sm:$0xff]  }
 0x31d   :  { %3313 = vmatpush3.bf16.msra.mxu0 %v3815_v38  ;;  %2776 = vmatprep.subr.bf16.mxu1 %v3818_v39  ;;  %v3891_v38 = vld [vmem:[%s5132_s7 + $0x5c0] ss:$28 sps:$4 sm:$0xff]  }
 0x31e   :  { %3314 = vmatprep.subr.bf16.mxu0 %v3819_v42  ;;  %v3896_v39 = vld [vmem:[%s5132_s7 + $0x5fc] ss:$28 sps:$4 sm:$0xff]  }
 0x31f   :  { %v3894_v42 = vld [vmem:[%s5132_s7 + $0x5f8] ss:$28 sps:$4 sm:$0xff]  }
 0x320   :  { %2777 = vmatpush1.bf16.msra.mxu1 %v3816_v44  ;;  %v3899_v44 = vld [vmem:[%s5132_s7 + $0x634] ss:$28 sps:$4 sm:$0xff]  }
 0x321   :  { %3315 = vmatpush3.bf16.msra.mxu0 %v3820_v47  ;;  %2778 = vmatprep.subr.bf16.mxu1 %v3823_v48  ;;  %v3897_v47 = vld [vmem:[%s5132_s7 + $0x630] ss:$28 sps:$4 sm:$0xff]  }
 0x322   :  { %3322 = vmatprep.subr.bf16.mxu0 %v3824_v50  ;;  %v3902_v48 = vld [vmem:[%s5132_s7 + $0x66c] ss:$28 sps:$4 sm:$0xff]  }
 0x323   :  { %v3900_v50 = vld [vmem:[%s5132_s7 + $0x668] ss:$28 sps:$4 sm:$0xff]  }
 0x324   :  { %2877 = vmatmul.mubr.bf16.vlgmr.msra.gmra.mrb[20].mxu0 %v4602_v2  ;;  %2779 = vmatpush1.bf16.msra.mxu1 %v3821_v51  ;;  %v3905_v51 = vld [vmem:[%s5132_s7 + $0x6a4] ss:$28 sps:$4 sm:$0xff]  }
 0x325   :  { %3323 = vmatpush3.bf16.msra.mxu0 %v3825_v52  ;;  %2916 = vmatprep.mubr.bf16.mxu0 %v4612_v5  ;;  %v3903_v52 = vld [vmem:[%s5132_s7 + $0x6a0] ss:$28 sps:$4 sm:$0xff]  }
 0x326   :  { %2780 = vmatprep.subr.bf16.mxu1 %v3828_v53  ;;  %3324 = vmatprep.subr.bf16.mxu0 %v3829_v54  ;;  %v3908_v53 = vld [vmem:[%s5132_s7 + $0x6dc] ss:$28 sps:$4 sm:$0xff]  }
 0x327   :  { %v3906_v54 = vld [vmem:[%s5132_s7 + $0x6d8] ss:$28 sps:$4 sm:$0xff]  }
 0x328   :  { %2781 = vmatpush1.bf16.msra.mxu1 %v3826_v55  ;;  %v1409_v55 = vld [vmem:[%s5135_s8] sm:$0x7f] }
 0x329   :  { %3325 = vmatpush3.bf16.msra.mxu0 %v3830_v56  ;;  %2782 = vmatprep.subr.bf16.mxu1 %v3833_v57  ;;  %v1414_v56 = vrot.slane %v1409_v55, %v4275_v45  ;;  %v1422_v57 = vrot.slane %v1409_v55, %v4347_v14 }
 0x32a   :  { %3326 = vmatprep.subr.bf16.mxu0 %v3834_v58  ;;  %v1418_v58 = vrot.slane %v1409_v55, %v4278_v46 }
 0x32c   :  { %2783 = vmatpush1.bf16.msra.mxu1 %v3831_v59  ;;  %v1426_v59 = vrot.slane %v1409_v55, %v495_v41 }
 0x32d   :  { %3327 = vmatpush3.bf16.msra.mxu0 %v3835_v60  ;;  %2784 = vmatprep.subr.bf16.mxu1 %v3838_v61 }
 0x32e   :  { %3328 = vmatprep.subr.bf16.mxu0 %v3839_v63 }
 0x330   :  { %2785 = vmatpush1.bf16.msra.mxu1 %v3836_v1 }
 0x331   :  { %3329 = vmatpush3.bf16.msra.mxu0 %v3840_v3  ;;  %2786 = vmatprep.subr.bf16.mxu1 %v3843_v4 }
 0x332   :  { %3330 = vmatprep.subr.bf16.mxu0 %v3844_v40 }
 0x334   :  { %2787 = vmatpush1.bf16.msra.mxu1 %v3841_v6 }
 0x335   :  { %3331 = vmatpush3.bf16.msra.mxu0 %v3845_v0  ;;  %2788 = vmatprep.subr.bf16.mxu1 %v3848_v7 }
 0x336   :  { %3332 = vmatprep.subr.bf16.mxu0 %v3849_v22 }
 0x338   :  { %2789 = vmatpush1.bf16.msra.mxu1 %v3846_v49 }
 0x339   :  { %3333 = vmatpush3.bf16.msra.mxu0 %v3850_v8  ;;  %2790 = vmatprep.subr.bf16.mxu1 %v3853_v9  ;;  %v1437_v8 = vsub.s32 6, %v4267_v43 }
 0x33a   :  { %3334 = vmatprep.subr.bf16.mxu0 %v3854_v10 }
 0x33b   :  { %v1438_v9 = vrot.slane %v1409_v55, %v1437_v8 }
 0x33c   :  { %2791 = vmatpush1.bf16.msra.mxu1 %v3851_v11 }
 0x33d   :  { %3335 = vmatpush3.bf16.msra.mxu0 %v3855_v13  ;;  %2792 = vmatprep.subr.bf16.mxu1 %v3858_v15 }
 0x33e   :  { %3336 = vmatprep.subr.bf16.mxu0 %v3859_v16 }
 0x340   :  { %2793 = vmatpush1.bf16.msra.mxu1 %v3856_v17 }
 0x341   :  { %3337 = vmatpush3.bf16.msra.mxu0 %v3860_v18  ;;  %2803 = vmatprep.subr.bf16.mxu1 %v3863_v19  ;;  %v1429_v19 = vsub.s32 4, %v4267_v43 }
 0x343   :  { %2795 = vmatmul.mubr.bf16.vlgmr.msra.gmra.mrb[8].mxu1 %v4602_v2  ;;  %v3872_v2 = vld [vmem:[%s5132_s7 + $0x43c] ss:$28 sps:$4 sm:$0xff]  }
 0x344   :  { %2917 = vmatmul.mubr.bf16.vlgmr.msra.gmra.mrb[24].mxu0 %v4804_v12  ;;  %2804 = vmatpush1.bf16.msra.mxu1 %v3861_v20  ;;  %v1433_v20 = vsub.s32 5, %v4267_v43 }
 0x345   :  { %2835 = vmatprep.mubr.bf16.mxu1 %v4612_v5  ;;  %2805 = vmatprep.subr.bf16.mxu1 %v3866_v21  ;;  %v3870_v5 = vld [vmem:[%s5132_s7 + $0x438] ss:$28 sps:$4 sm:$0xff]   ;;  %v1430_v21 = vrot.slane %v1409_v55, %v1429_v19 }
 0x348   :  { %2806 = vmatpush1.bf16.msra.mxu1 %v3864_v62  ;;  %v1434_v62 = vrot.slane %v1409_v55, %v1433_v20 }
 0x349   :  { %2807 = vmatprep.subr.bf16.mxu1 %v3869_v23 }
 0x34c   :  { %2808 = vmatpush1.bf16.msra.mxu1 %v3867_v24 }
 0x34d   :  { %2809 = vmatprep.subr.bf16.mxu1 %v3872_v2 }
 0x350   :  { %2810 = vmatpush1.bf16.msra.mxu1 %v3870_v5 }
 0x351   :  { %2811 = vmatprep.subr.bf16.mxu1 %v3875_v25 }
 0x354   :  { %2812 = vmatpush1.bf16.msra.mxu1 %v3873_v26 }
 0x355   :  { %2813 = vmatprep.subr.bf16.mxu1 %v3878_v27 }
 0x358   :  { %2814 = vmatpush1.bf16.msra.mxu1 %v3876_v28 }
 0x359   :  { %2815 = vmatprep.subr.bf16.mxu1 %v3881_v29 }
 0x35c   :  { %2816 = vmatpush1.bf16.msra.mxu1 %v3879_v30 }
 0x35d   :  { %2817 = vmatprep.subr.bf16.mxu1 %v3884_v31 }
 0x360   :  { %2818 = vmatpush1.bf16.msra.mxu1 %v3882_v32 }
 0x361   :  { %2819 = vmatprep.subr.bf16.mxu1 %v3887_v33 }
 0x364   :  { %2820 = vmatpush1.bf16.msra.mxu1 %v3885_v34 }
 0x365   :  { %2821 = vmatprep.subr.bf16.mxu1 %v3890_v35 }
 0x368   :  { %2822 = vmatpush1.bf16.msra.mxu1 %v3888_v36 }
 0x369   :  { %2823 = vmatprep.subr.bf16.mxu1 %v3893_v37 }
 0x36c   :  { %2824 = vmatpush1.bf16.msra.mxu1 %v3891_v38 }
 0x36d   :  { %2825 = vmatprep.subr.bf16.mxu1 %v3896_v39 }
 0x370   :  { %2826 = vmatpush1.bf16.msra.mxu1 %v3894_v42 }
 0x371   :  { %2827 = vmatprep.subr.bf16.mxu1 %v3899_v44 }
 0x374   :  { %2828 = vmatpush1.bf16.msra.mxu1 %v3897_v47 }
 0x375   :  { %2829 = vmatprep.subr.bf16.mxu1 %v3902_v48 }
 0x378   :  { %2830 = vmatpush1.bf16.msra.mxu1 %v3900_v50 }
 0x379   :  { %2831 = vmatprep.subr.bf16.mxu1 %v3905_v51 }
 0x37c   :  { %2832 = vmatpush1.bf16.msra.mxu1 %v3903_v52 }
 0x37d   :  { %2833 = vmatprep.subr.bf16.mxu1 %v3908_v53 }
 0x380   :  { %2834 = vmatpush1.bf16.msra.mxu1 %v3906_v54 }
 0x383   :  { %2836 = vmatmul.mubr.bf16.vlgmr.msra.gmra.mrb[8].mxu1 %v4804_v12 }
 0x3d6   :  { %v2673_v60 = vpop.f32.mrb[4].mxu1  ;;  %v2755_v61 = vpop.f32.mrb[16].mxu0 }
 0x3d7   :  { %v3380_v63 = vadd.f32 %v2673_v60, %v1414_v56  ;;  %v3382_v1 = vadd.f32 %v2755_v61, %v1422_v57  ;;  %v2675_v3 = vpop.f32.mrb[5].mxu1  ;;  %v2757_v4 = vpop.f32.mrb[17].mxu0 }
 0x3d8   :  { %v3381_v12 = vadd.f32 %v2675_v3, %v1418_v58  ;;  %v3383_v40 = vadd.f32 %v2757_v4, %v1426_v59  ;;  %v2677_v6 = vpop.f32.mrb[6].mxu1  ;;  %v2759_v0 = vpop.f32.mrb[18].mxu0 }
 0x3d9   :  { %2924 = vst [vmem:[%s5136_s9] sm:$0xff] %v3380_v63  ;;  %2926 = vst [vmem:[%s5136_s9 + $0x10] sm:$0xff] %v3382_v1  ;;  %v2678_v45 = vpop.f32.mrb[7].mxu1  ;;  %v2760_v46 = vpop.f32.mrb[19].mxu0 }
 0x3da   :  { %2925 = vst [vmem:[%s5136_s9 + $0x8] sm:$0xff] %v3381_v12  ;;  %2927 = vst [vmem:[%s5136_s9 + $0x18] sm:$0xff] %v3383_v40 }
 0x3f7   :  { %v3316_v14 = vpop.f32.mrb[20].mxu0 }
 0x3f8   :  { %v3317_v41 = vpop.f32.mrb[21].mxu0 }
 0x3f9   :  { %v3318_v7 = vadd.f32 %v3317_v41, %v3316_v14  ;;  %v3319_v22 = vpop.f32.mrb[22].mxu0 }
 0x3fa   :  { %v3320_v49 = vpop.f32.mrb[23].mxu0 }
 0x3fb   :  { %v2879_v13 = vadd.f32 %v3318_v7, %v1438_v9 }
 0x417   :  { %v3338_v10 = vpop.f32.mrb[24].mxu0 }
 0x418   :  { %v3339_v11 = vpop.f32.mrb[25].mxu0 }
 0x419   :  { %v3340_v15 = vadd.f32 %v3339_v11, %v3338_v10  ;;  %v3341_v16 = vpop.f32.mrb[26].mxu0 }
 0x41a   :  { %v3342_v17 = vpop.f32.mrb[27].mxu0 }
 0x41b   :  { %v2919_v18 = vadd.f32 %v3340_v15, %v2879_v13 }
 0x41d   :  { %2931 = vst.msk [vmem:[%s5136_s9 + $0x30] sm:$0xff] %vm2930_vm2, %v2919_v18 }
 0x456   :  { %v2837_v23 = vpop.f32.mrb[8].mxu1 }
 0x457   :  { %v3384_v24 = vadd.f32 %v2837_v23, %v1430_v21  ;;  %v2839_v2 = vpop.f32.mrb[9].mxu1 }
 0x458   :  { %v3385_v5 = vadd.f32 %v2839_v2, %v1434_v62  ;;  %v2841_v25 = vpop.f32.mrb[10].mxu1 }
 0x459   :  { %2928 = vst [vmem:[%s5136_s9 + $0x20] sm:$0xff] %v3384_v24  ;;  %v2842_v26 = vpop.f32.mrb[11].mxu1 }
 0x45a   :  { %2929 = vst [vmem:[%s5136_s9 + $0x28] sm:$0xff] %v3385_v5 }

</bundles_post_ra>
